<compile_context>
chip_gen: v6e
topology: v6e:2x2x1
jax: 0.10.0
libtpu: 0.0.40
codegen_flags: <defaults>
</compile_context>

<pallas_src>
import functools

import jax
import jax.numpy as jnp
from jax.experimental import pallas as pl
from jax.experimental.pallas import tpu as pltpu  # noqa: F401  (TPU backend)

# Hyperparameters implied by the module's __init__ (small, deterministic).
VOCAB_SIZE = 65
BLOCK_SIZE = 8        # block_size (max context length)
N_EMBED = 32          # n_embed
N_HEAD = 4            # n_head
N_LAYER = 2           # n_layer
HEAD_SIZE = N_EMBED // N_HEAD    # 8
HC = N_HEAD * HEAD_SIZE          # 32 (width of concatenated head outputs)
LN_EPS = 1e-5         # PyTorch nn.LayerNorm default
V_PAD = 128           # vocab padded to a lane-dense 128-wide logits store
NEG_BIG = -1e30       # additive mask / padding bias (finite, avoids -inf math)


def _layer_norm(x, g, b):
    mu = jnp.mean(x, axis=-1, keepdims=True)
    var = jnp.mean(jnp.square(x - mu), axis=-1, keepdims=True)
    return (x - mu) * jax.lax.rsqrt(var + LN_EPS) * g + b


# ----------------------------------------------------------------------------
# Single fused forward kernel. All arrays are whole-array VMEM blocks, no grid.
# Per-layer weights are stacked on a leading L axis and indexed statically.
# ----------------------------------------------------------------------------
def _fused_forward_kernel(idx_ref, pos_ref, bias_ref, tok_ref,
                          ln1_g_ref, ln1_b_ref, wqkv_ref, wo_ref, bo_ref,
                          ln2_g_ref, ln2_b_ref, w1_ref, b1_ref, w2_ref, b2_ref,
                          wh_ref, bh_ref, o_ref, *, n_rows):
    N = n_rows

    # ---- token + positional embedding (gather as one-hot matmul, one push) ----
    ids = idx_ref[...]                                               # (N, 1) int32
    cols = jax.lax.broadcasted_iota(jnp.int32, (N, V_PAD), 1)
    one_hot = (cols == ids).astype(jnp.float32)                      # (N, 128)
    x = jnp.dot(one_hot, tok_ref[...],
                preferred_element_type=jnp.float32) + pos_ref[...]   # (N, C)

    bias = bias_ref[...]                                             # (H*N, N)

    for l in range(N_LAYER):                   # static unroll over layers
        # ---- multi-head causal self-attention sublayer ----
        xn = _layer_norm(x, ln1_g_ref[l], ln1_b_ref[l])
        # fused QKV: ONE 2D matmul; 1/sqrt(head_size) folded into W_q at init
        qkv = jnp.dot(xn, wqkv_ref[l],
                      preferred_element_type=jnp.float32)            # (N, 3*HC)

        # per-head scores, row-stacked so the softmax runs once for all heads
        scores = []
        for h in range(N_HEAD):
            qh = qkv[:, h * HEAD_SIZE:(h + 1) * HEAD_SIZE]
            kh = qkv[:, HC + h * HEAD_SIZE:HC + (h + 1) * HEAD_SIZE]
            scores.append(jnp.einsum('qd,kd->qk', qh, kh,
                                     preferred_element_type=jnp.float32))
        s = jnp.concatenate(scores, axis=0) + bias                   # (H*N, N)
        s = s - jnp.max(s, axis=-1, keepdims=True)
        p = jnp.exp(s)
        p = p * pl.reciprocal(jnp.sum(p, axis=-1, keepdims=True), approx=True)

        # per-head attention-weighted values, lane-concatenated to (N, HC)
        outs = []
        for h in range(N_HEAD):
            vh = qkv[:, 2 * HC + h * HEAD_SIZE:2 * HC + (h + 1) * HEAD_SIZE]
            outs.append(jnp.dot(p[h * N:(h + 1) * N, :], vh,
                                preferred_element_type=jnp.float32))
        oh = jnp.concatenate(outs, axis=1)                           # (N, HC)

        # output projection + head sum fused into ONE matmul
        x = x + jnp.dot(oh, wo_ref[l],
                        preferred_element_type=jnp.float32) + bo_ref[l]
        # TODO(synk): nn.Dropout inside Block is identity at inference; omitted.

        # ---- feed-forward sublayer (hidden = 4*C = 128, lane-dense) ----
        xn2 = _layer_norm(x, ln2_g_ref[l], ln2_b_ref[l])
        h1 = jnp.dot(xn2, w1_ref[l], preferred_element_type=jnp.float32) + b1_ref[l]
        h1 = jnp.maximum(h1, 0.0)
        x = x + jnp.dot(h1, w2_ref[l], preferred_element_type=jnp.float32) + b2_ref[l]

    # TODO(synk): ln_f is defined in the module but never applied in forward(); skipped.
    # ---- lm head: lane-dense (V padded 65 -> 128) logits store ----
    o_ref[...] = (jnp.dot(x, wh_ref[...], preferred_element_type=jnp.float32)
                  + bh_ref[...])


# ----------------------------------------------------------------------------
# Parameter init (deterministic, synthetic) + full forward
# ----------------------------------------------------------------------------
def init_params(key):
    C, Hf, V = N_EMBED, 4 * N_EMBED, VOCAB_SIZE
    keys = iter(jax.random.split(key, 64))
    nrm = lambda shape: 0.02 * jax.random.normal(next(keys), shape, jnp.float32)
    scale = HEAD_SIZE ** -0.5

    ln1_g, ln1_b, wqkv, wo, bo = [], [], [], [], []
    ln2_g, ln2_b, w1, b1, w2, b2 = [], [], [], [], [], []
    for _ in range(N_LAYER):
        ln1_g.append(jnp.ones((1, C), jnp.float32))
        ln1_b.append(jnp.zeros((1, C), jnp.float32))
        # Per-head output channels are contiguous 8-wide column groups.
        # NOTE: the 1/sqrt(head_size) attention scale is folded into W_q here;
        # loading a real checkpoint requires the same folding.
        wq, wk, wv = nrm((C, HC)), nrm((C, HC)), nrm((C, HC))
        wqkv.append(jnp.concatenate([wq * scale, wk, wv], axis=1))   # (C, 3*HC)
        wo.append(nrm((HC, C)))                                      # (HC, C)
        bo.append(jnp.zeros((1, C), jnp.float32))
        ln2_g.append(jnp.ones((1, C), jnp.float32))
        ln2_b.append(jnp.zeros((1, C), jnp.float32))
        w1.append(nrm((C, Hf)))
        b1.append(jnp.zeros((1, Hf), jnp.float32))
        w2.append(nrm((Hf, C)))
        b2.append(jnp.zeros((1, C), jnp.float32))

    tok = nrm((V, C))
    head_w = nrm((C, V))
    # Padding logit columns get a -1e30 bias so the lane-dense (N,128) output
    # is safe even if consumed directly (the wrapper still slices to 65).
    head_b_pad = jnp.concatenate(
        [jnp.zeros((1, V), jnp.float32),
         jnp.full((1, V_PAD - V), NEG_BIG, jnp.float32)], axis=1)
    return dict(
        tok_table_p=jnp.pad(tok, ((0, V_PAD - V), (0, 0))),          # (128, C)
        pos_table=nrm((BLOCK_SIZE, C)),
        ln1_g=jnp.stack(ln1_g), ln1_b=jnp.stack(ln1_b),
        wqkv=jnp.stack(wqkv), wo=jnp.stack(wo), bo=jnp.stack(bo),
        ln2_g=jnp.stack(ln2_g), ln2_b=jnp.stack(ln2_b),
        w1=jnp.stack(w1), b1=jnp.stack(b1),
        w2=jnp.stack(w2), b2=jnp.stack(b2),
        lm_head_w_p=jnp.pad(head_w, ((0, 0), (0, V_PAD - V))),       # (C, 128)
        lm_head_b_p=head_b_pad,                                      # (1, 128)
    )


def bigram_lm_forward(idx, params, targets=None):
    B, T = idx.shape
    assert T <= BLOCK_SIZE
    N = B * T
    idx2 = idx.reshape(N, 1).astype(jnp.int32)

    # Hoisted out of the kernel (perf feedback): positional table pre-tiled to
    # (N, C) and the block-diagonal causal mask as an additive bias, pre-tiled
    # over heads to (H*N, N).
    pos_tiled = jnp.tile(params["pos_table"][:T], (B, 1))
    row = jnp.arange(N)[:, None]
    col = jnp.arange(N)[None, :]
    allowed = jnp.logical_and(row // T == col // T, col <= row)
    attn_bias = jnp.tile(
        jnp.where(allowed, 0.0, NEG_BIG).astype(jnp.float32), (N_HEAD, 1))

    kernel = functools.partial(_fused_forward_kernel, n_rows=N)
    logits_pad = pl.pallas_call(
        kernel,
        out_shape=jax.ShapeDtypeStruct((N, V_PAD), jnp.float32),
    )(idx2, pos_tiled, attn_bias, params["tok_table_p"],
      params["ln1_g"], params["ln1_b"], params["wqkv"], params["wo"], params["bo"],
      params["ln2_g"], params["ln2_b"], params["w1"], params["b1"],
      params["w2"], params["b2"],
      params["lm_head_w_p"], params["lm_head_b_p"])

    logits = logits_pad[:, :VOCAB_SIZE].reshape(B, T, VOCAB_SIZE)
    if targets is None:
        loss = None
    else:
        logp = jax.nn.log_softmax(logits.reshape(N, VOCAB_SIZE), axis=-1)
        loss = -jnp.mean(jnp.take_along_axis(
            logp, targets.reshape(N, 1).astype(jnp.int32), axis=1))
    return logits, loss


if __name__ == "__main__":
    key = jax.random.PRNGKey(0)
    pkey, ikey = jax.random.split(key)
    params = init_params(pkey)

    B, T = 2, BLOCK_SIZE
    idx = jax.random.randint(ikey, (B, T), 0, VOCAB_SIZE, dtype=jnp.int32)

    logits, loss = bigram_lm_forward(idx, params, targets=None)
    logits = jax.block_until_ready(logits)

    assert logits.shape == (B, T, VOCAB_SIZE), logits.shape
    assert loss is None
    assert bool(jnp.all(jnp.isfinite(logits)))
    print("KERNEL_OK")
</pallas_src>

<mosaic_0001>
module attributes {stable_mosaic.version = 11 : i64} {
  func.func @_fused_forward_kernel(%arg0: memref<16x1xi32, #tpu.memory_space<vmem>>, %arg1: memref<16x32xf32, #tpu.memory_space<vmem>>, %arg2: memref<64x16xf32, #tpu.memory_space<vmem>>, %arg3: memref<128x32xf32, #tpu.memory_space<vmem>>, %arg4: memref<2x1x32xf32, #tpu.memory_space<vmem>>, %arg5: memref<2x1x32xf32, #tpu.memory_space<vmem>>, %arg6: memref<2x32x96xf32, #tpu.memory_space<vmem>>, %arg7: memref<2x32x32xf32, #tpu.memory_space<vmem>>, %arg8: memref<2x1x32xf32, #tpu.memory_space<vmem>>, %arg9: memref<2x1x32xf32, #tpu.memory_space<vmem>>, %arg10: memref<2x1x32xf32, #tpu.memory_space<vmem>>, %arg11: memref<2x32x128xf32, #tpu.memory_space<vmem>>, %arg12: memref<2x1x128xf32, #tpu.memory_space<vmem>>, %arg13: memref<2x128x32xf32, #tpu.memory_space<vmem>>, %arg14: memref<2x1x32xf32, #tpu.memory_space<vmem>>, %arg15: memref<32x128xf32, #tpu.memory_space<vmem>>, %arg16: memref<1x128xf32, #tpu.memory_space<vmem>>, %arg17: memref<16x128xf32, #tpu.memory_space<vmem>>) attributes {dimension_semantics = [], scalar_prefetch = 0 : i64, scratch_operands = 0 : i64, tpu.core_type = #tpu.core_type<tc>} {
    %c0 = arith.constant 0 : index
    %c0_0 = arith.constant 0 : index
    %0 = vector.load %arg0[%c0, %c0_0] : memref<16x1xi32, #tpu.memory_space<vmem>>, vector<16x1xi32>
    %1 = tpu.iota {dimensions = array<i32: 1>} : vector<16x128xi32>
    %2 = vector.broadcast %0 : vector<16x1xi32> to vector<16x128xi32>
    %3 = arith.cmpi eq, %1, %2 : vector<16x128xi32>
    %4 = arith.extui %3 : vector<16x128xi1> to vector<16x128xi32>
    %5 = arith.sitofp %4 : vector<16x128xi32> to vector<16x128xf32>
    %c0_1 = arith.constant 0 : index
    %c0_2 = arith.constant 0 : index
    %6 = vector.load %arg3[%c0_1, %c0_2] : memref<128x32xf32, #tpu.memory_space<vmem>>, vector<128x32xf32>
    %cst = arith.constant dense<0.000000e+00> : vector<16x32xf32>
    %7 = tpu.matmul %5, %6, %cst {dimension_numbers = #tpu.dot_dimension_numbers<[1], [0], [0], [1], [0, 0, 1, 1], [], []>} : vector<16x128xf32>, vector<128x32xf32>, vector<16x32xf32> -> vector<16x32xf32>
    %c0_3 = arith.constant 0 : index
    %c0_4 = arith.constant 0 : index
    %8 = vector.load %arg1[%c0_3, %c0_4] : memref<16x32xf32, #tpu.memory_space<vmem>>, vector<16x32xf32>
    %9 = arith.addf %7, %8 : vector<16x32xf32>
    %c0_5 = arith.constant 0 : index
    %c0_6 = arith.constant 0 : index
    %10 = vector.load %arg2[%c0_5, %c0_6] : memref<64x16xf32, #tpu.memory_space<vmem>>, vector<64x16xf32>
    %c0_7 = arith.constant 0 : index
    %c0_8 = arith.constant 0 : index
    %c0_9 = arith.constant 0 : index
    %11 = vector.load %arg4[%c0_7, %c0_8, %c0_9] : memref<2x1x32xf32, #tpu.memory_space<vmem>>, vector<1x1x32xf32>
    %12 = vector.shape_cast %11 : vector<1x1x32xf32> to vector<1x32xf32>
    %c0_10 = arith.constant 0 : index
    %c0_11 = arith.constant 0 : index
    %c0_12 = arith.constant 0 : index
    %13 = vector.load %arg5[%c0_10, %c0_11, %c0_12] : memref<2x1x32xf32, #tpu.memory_space<vmem>>, vector<1x1x32xf32>
    %14 = vector.shape_cast %13 : vector<1x1x32xf32> to vector<1x32xf32>
    %cst_13 = arith.constant dense<0.000000e+00> : vector<16xf32>
    %15 = vector.multi_reduction <add>, %9, %cst_13 [1] : vector<16x32xf32> to vector<16xf32>
    %16 = vector.shape_cast %15 : vector<16xf32> to vector<16x1xf32>
    %cst_14 = arith.constant 3.200000e+01 : f32
    %17 = vector.broadcast %cst_14 : f32 to vector<16x1xf32>
    %18 = arith.divf %16, %17 : vector<16x1xf32>
    %19 = vector.broadcast %18 : vector<16x1xf32> to vector<16x32xf32>
    %20 = arith.subf %9, %19 : vector<16x32xf32>
    %21 = arith.mulf %20, %20 : vector<16x32xf32>
    %cst_15 = arith.constant dense<0.000000e+00> : vector<16xf32>
    %22 = vector.multi_reduction <add>, %21, %cst_15 [1] : vector<16x32xf32> to vector<16xf32>
    %23 = vector.shape_cast %22 : vector<16xf32> to vector<16x1xf32>
    %cst_16 = arith.constant 3.200000e+01 : f32
    %24 = vector.broadcast %cst_16 : f32 to vector<16x1xf32>
    %25 = arith.divf %23, %24 : vector<16x1xf32>
    %26 = vector.broadcast %18 : vector<16x1xf32> to vector<16x32xf32>
    %27 = arith.subf %9, %26 : vector<16x32xf32>
    %cst_17 = arith.constant 9.99999974E-6 : f32
    %28 = vector.broadcast %cst_17 : f32 to vector<16x1xf32>
    %29 = arith.addf %25, %28 : vector<16x1xf32>
    %30 = math.rsqrt %29 : vector<16x1xf32>
    %31 = vector.broadcast %30 : vector<16x1xf32> to vector<16x32xf32>
    %32 = arith.mulf %27, %31 : vector<16x32xf32>
    %33 = vector.broadcast %12 : vector<1x32xf32> to vector<16x32xf32>
    %34 = arith.mulf %32, %33 : vector<16x32xf32>
    %35 = vector.broadcast %14 : vector<1x32xf32> to vector<16x32xf32>
    %36 = arith.addf %34, %35 : vector<16x32xf32>
    %c0_18 = arith.constant 0 : index
    %c0_19 = arith.constant 0 : index
    %c0_20 = arith.constant 0 : index
    %37 = vector.load %arg6[%c0_18, %c0_19, %c0_20] : memref<2x32x96xf32, #tpu.memory_space<vmem>>, vector<1x32x96xf32>
    %38 = vector.shape_cast %37 : vector<1x32x96xf32> to vector<32x96xf32>
    %cst_21 = arith.constant dense<0.000000e+00> : vector<16x96xf32>
    %39 = tpu.matmul %36, %38, %cst_21 {dimension_numbers = #tpu.dot_dimension_numbers<[1], [0], [0], [1], [0, 0, 1, 1], [], []>} : vector<16x32xf32>, vector<32x96xf32>, vector<16x96xf32> -> vector<16x96xf32>
    %40 = vector.extract_strided_slice %39 {offsets = [0, 0], sizes = [16, 8], strides = [1, 1]} : vector<16x96xf32> to vector<16x8xf32>
    %41 = vector.extract_strided_slice %39 {offsets = [0, 32], sizes = [16, 8], strides = [1, 1]} : vector<16x96xf32> to vector<16x8xf32>
    "tpu.trace_start"() <{level = 10 : i32, message = "qd,kd->qk"}> : () -> ()
    %cst_22 = arith.constant dense<0.000000e+00> : vector<16x16xf32>
    %42 = tpu.matmul %40, %41, %cst_22 {dimension_numbers = #tpu.dot_dimension_numbers<[1], [1], [0], [0], [0, 0, 1, 0], [], []>} : vector<16x8xf32>, vector<16x8xf32>, vector<16x16xf32> -> vector<16x16xf32>
    "tpu.trace_stop"() : () -> ()
    %43 = vector.extract_strided_slice %39 {offsets = [0, 8], sizes = [16, 8], strides = [1, 1]} : vector<16x96xf32> to vector<16x8xf32>
    %44 = vector.extract_strided_slice %39 {offsets = [0, 40], sizes = [16, 8], strides = [1, 1]} : vector<16x96xf32> to vector<16x8xf32>
    "tpu.trace_start"() <{level = 10 : i32, message = "qd,kd->qk"}> : () -> ()
    %cst_23 = arith.constant dense<0.000000e+00> : vector<16x16xf32>
    %45 = tpu.matmul %43, %44, %cst_23 {dimension_numbers = #tpu.dot_dimension_numbers<[1], [1], [0], [0], [0, 0, 1, 0], [], []>} : vector<16x8xf32>, vector<16x8xf32>, vector<16x16xf32> -> vector<16x16xf32>
    "tpu.trace_stop"() : () -> ()
    %46 = vector.extract_strided_slice %39 {offsets = [0, 16], sizes = [16, 8], strides = [1, 1]} : vector<16x96xf32> to vector<16x8xf32>
    %47 = vector.extract_strided_slice %39 {offsets = [0, 48], sizes = [16, 8], strides = [1, 1]} : vector<16x96xf32> to vector<16x8xf32>
    "tpu.trace_start"() <{level = 10 : i32, message = "qd,kd->qk"}> : () -> ()
    %cst_24 = arith.constant dense<0.000000e+00> : vector<16x16xf32>
    %48 = tpu.matmul %46, %47, %cst_24 {dimension_numbers = #tpu.dot_dimension_numbers<[1], [1], [0], [0], [0, 0, 1, 0], [], []>} : vector<16x8xf32>, vector<16x8xf32>, vector<16x16xf32> -> vector<16x16xf32>
    "tpu.trace_stop"() : () -> ()
    %49 = vector.extract_strided_slice %39 {offsets = [0, 24], sizes = [16, 8], strides = [1, 1]} : vector<16x96xf32> to vector<16x8xf32>
    %50 = vector.extract_strided_slice %39 {offsets = [0, 56], sizes = [16, 8], strides = [1, 1]} : vector<16x96xf32> to vector<16x8xf32>
    "tpu.trace_start"() <{level = 10 : i32, message = "qd,kd->qk"}> : () -> ()
    %cst_25 = arith.constant dense<0.000000e+00> : vector<16x16xf32>
    %51 = tpu.matmul %49, %50, %cst_25 {dimension_numbers = #tpu.dot_dimension_numbers<[1], [1], [0], [0], [0, 0, 1, 0], [], []>} : vector<16x8xf32>, vector<16x8xf32>, vector<16x16xf32> -> vector<16x16xf32>
    "tpu.trace_stop"() : () -> ()
    %52 = tpu.concatenate %42, %45, %48, %51 in 0 : vector<16x16xf32>, vector<16x16xf32>, vector<16x16xf32>, vector<16x16xf32> -> vector<64x16xf32>
    %53 = arith.addf %52, %10 : vector<64x16xf32>
    %cst_26 = arith.constant dense<0xFF800000> : vector<64xf32>
    %54 = vector.multi_reduction <maximumf>, %53, %cst_26 [1] : vector<64x16xf32> to vector<64xf32>
    %55 = vector.shape_cast %54 : vector<64xf32> to vector<64x1xf32>
    %56 = vector.broadcast %55 : vector<64x1xf32> to vector<64x16xf32>
    %57 = arith.subf %53, %56 : vector<64x16xf32>
    %58 = math.exp %57 : vector<64x16xf32>
    %cst_27 = arith.constant dense<0.000000e+00> : vector<64xf32>
    %59 = vector.multi_reduction <add>, %58, %cst_27 [1] : vector<64x16xf32> to vector<64xf32>
    %60 = vector.shape_cast %59 : vector<64xf32> to vector<64x1xf32>
    %61 = tpu.reciprocal %60 {approx = true} : vector<64x1xf32> -> vector<64x1xf32>
    %62 = vector.broadcast %61 : vector<64x1xf32> to vector<64x16xf32>
    %63 = arith.mulf %58, %62 : vector<64x16xf32>
    %64 = vector.extract_strided_slice %39 {offsets = [0, 64], sizes = [16, 8], strides = [1, 1]} : vector<16x96xf32> to vector<16x8xf32>
    %65 = vector.extract_strided_slice %63 {offsets = [0, 0], sizes = [16, 16], strides = [1, 1]} : vector<64x16xf32> to vector<16x16xf32>
    %cst_28 = arith.constant dense<0.000000e+00> : vector<16x8xf32>
    %66 = tpu.matmul %65, %64, %cst_28 {dimension_numbers = #tpu.dot_dimension_numbers<[1], [0], [0], [1], [0, 0, 1, 1], [], []>} : vector<16x16xf32>, vector<16x8xf32>, vector<16x8xf32> -> vector<16x8xf32>
    %67 = vector.extract_strided_slice %39 {offsets = [0, 72], sizes = [16, 8], strides = [1, 1]} : vector<16x96xf32> to vector<16x8xf32>
    %68 = vector.extract_strided_slice %63 {offsets = [16, 0], sizes = [16, 16], strides = [1, 1]} : vector<64x16xf32> to vector<16x16xf32>
    %cst_29 = arith.constant dense<0.000000e+00> : vector<16x8xf32>
    %69 = tpu.matmul %68, %67, %cst_29 {dimension_numbers = #tpu.dot_dimension_numbers<[1], [0], [0], [1], [0, 0, 1, 1], [], []>} : vector<16x16xf32>, vector<16x8xf32>, vector<16x8xf32> -> vector<16x8xf32>
    %70 = vector.extract_strided_slice %39 {offsets = [0, 80], sizes = [16, 8], strides = [1, 1]} : vector<16x96xf32> to vector<16x8xf32>
    %71 = vector.extract_strided_slice %63 {offsets = [32, 0], sizes = [16, 16], strides = [1, 1]} : vector<64x16xf32> to vector<16x16xf32>
    %cst_30 = arith.constant dense<0.000000e+00> : vector<16x8xf32>
    %72 = tpu.matmul %71, %70, %cst_30 {dimension_numbers = #tpu.dot_dimension_numbers<[1], [0], [0], [1], [0, 0, 1, 1], [], []>} : vector<16x16xf32>, vector<16x8xf32>, vector<16x8xf32> -> vector<16x8xf32>
    %73 = vector.extract_strided_slice %39 {offsets = [0, 88], sizes = [16, 8], strides = [1, 1]} : vector<16x96xf32> to vector<16x8xf32>
    %74 = vector.extract_strided_slice %63 {offsets = [48, 0], sizes = [16, 16], strides = [1, 1]} : vector<64x16xf32> to vector<16x16xf32>
    %cst_31 = arith.constant dense<0.000000e+00> : vector<16x8xf32>
    %75 = tpu.matmul %74, %73, %cst_31 {dimension_numbers = #tpu.dot_dimension_numbers<[1], [0], [0], [1], [0, 0, 1, 1], [], []>} : vector<16x16xf32>, vector<16x8xf32>, vector<16x8xf32> -> vector<16x8xf32>
    %76 = tpu.concatenate %66, %69, %72, %75 in 1 : vector<16x8xf32>, vector<16x8xf32>, vector<16x8xf32>, vector<16x8xf32> -> vector<16x32xf32>
    %c0_32 = arith.constant 0 : index
    %c0_33 = arith.constant 0 : index
    %c0_34 = arith.constant 0 : index
    %77 = vector.load %arg7[%c0_32, %c0_33, %c0_34] : memref<2x32x32xf32, #tpu.memory_space<vmem>>, vector<1x32x32xf32>
    %78 = vector.shape_cast %77 : vector<1x32x32xf32> to vector<32x32xf32>
    %cst_35 = arith.constant dense<0.000000e+00> : vector<16x32xf32>
    %79 = tpu.matmul %76, %78, %cst_35 {dimension_numbers = #tpu.dot_dimension_numbers<[1], [0], [0], [1], [0, 0, 1, 1], [], []>} : vector<16x32xf32>, vector<32x32xf32>, vector<16x32xf32> -> vector<16x32xf32>
    %80 = arith.addf %9, %79 : vector<16x32xf32>
    %c0_36 = arith.constant 0 : index
    %c0_37 = arith.constant 0 : index
    %c0_38 = arith.constant 0 : index
    %81 = vector.load %arg8[%c0_36, %c0_37, %c0_38] : memref<2x1x32xf32, #tpu.memory_space<vmem>>, vector<1x1x32xf32>
    %82 = vector.shape_cast %81 : vector<1x1x32xf32> to vector<1x32xf32>
    %83 = vector.broadcast %82 : vector<1x32xf32> to vector<16x32xf32>
    %84 = arith.addf %80, %83 : vector<16x32xf32>
    %c0_39 = arith.constant 0 : index
    %c0_40 = arith.constant 0 : index
    %c0_41 = arith.constant 0 : index
    %85 = vector.load %arg9[%c0_39, %c0_40, %c0_41] : memref<2x1x32xf32, #tpu.memory_space<vmem>>, vector<1x1x32xf32>
    %86 = vector.shape_cast %85 : vector<1x1x32xf32> to vector<1x32xf32>
    %c0_42 = arith.constant 0 : index
    %c0_43 = arith.constant 0 : index
    %c0_44 = arith.constant 0 : index
    %87 = vector.load %arg10[%c0_42, %c0_43, %c0_44] : memref<2x1x32xf32, #tpu.memory_space<vmem>>, vector<1x1x32xf32>
    %88 = vector.shape_cast %87 : vector<1x1x32xf32> to vector<1x32xf32>
    %cst_45 = arith.constant dense<0.000000e+00> : vector<16xf32>
    %89 = vector.multi_reduction <add>, %84, %cst_45 [1] : vector<16x32xf32> to vector<16xf32>
    %90 = vector.shape_cast %89 : vector<16xf32> to vector<16x1xf32>
    %cst_46 = arith.constant 3.200000e+01 : f32
    %91 = vector.broadcast %cst_46 : f32 to vector<16x1xf32>
    %92 = arith.divf %90, %91 : vector<16x1xf32>
    %93 = vector.broadcast %92 : vector<16x1xf32> to vector<16x32xf32>
    %94 = arith.subf %84, %93 : vector<16x32xf32>
    %95 = arith.mulf %94, %94 : vector<16x32xf32>
    %cst_47 = arith.constant dense<0.000000e+00> : vector<16xf32>
    %96 = vector.multi_reduction <add>, %95, %cst_47 [1] : vector<16x32xf32> to vector<16xf32>
    %97 = vector.shape_cast %96 : vector<16xf32> to vector<16x1xf32>
    %cst_48 = arith.constant 3.200000e+01 : f32
    %98 = vector.broadcast %cst_48 : f32 to vector<16x1xf32>
    %99 = arith.divf %97, %98 : vector<16x1xf32>
    %100 = vector.broadcast %92 : vector<16x1xf32> to vector<16x32xf32>
    %101 = arith.subf %84, %100 : vector<16x32xf32>
    %cst_49 = arith.constant 9.99999974E-6 : f32
    %102 = vector.broadcast %cst_49 : f32 to vector<16x1xf32>
    %103 = arith.addf %99, %102 : vector<16x1xf32>
    %104 = math.rsqrt %103 : vector<16x1xf32>
    %105 = vector.broadcast %104 : vector<16x1xf32> to vector<16x32xf32>
    %106 = arith.mulf %101, %105 : vector<16x32xf32>
    %107 = vector.broadcast %86 : vector<1x32xf32> to vector<16x32xf32>
    %108 = arith.mulf %106, %107 : vector<16x32xf32>
    %109 = vector.broadcast %88 : vector<1x32xf32> to vector<16x32xf32>
    %110 = arith.addf %108, %109 : vector<16x32xf32>
    %c0_50 = arith.constant 0 : index
    %c0_51 = arith.constant 0 : index
    %c0_52 = arith.constant 0 : index
    %111 = vector.load %arg11[%c0_50, %c0_51, %c0_52] : memref<2x32x128xf32, #tpu.memory_space<vmem>>, vector<1x32x128xf32>
    %112 = vector.shape_cast %111 : vector<1x32x128xf32> to vector<32x128xf32>
    %cst_53 = arith.constant dense<0.000000e+00> : vector<16x128xf32>
    %113 = tpu.matmul %110, %112, %cst_53 {dimension_numbers = #tpu.dot_dimension_numbers<[1], [0], [0], [1], [0, 0, 1, 1], [], []>} : vector<16x32xf32>, vector<32x128xf32>, vector<16x128xf32> -> vector<16x128xf32>
    %c0_54 = arith.constant 0 : index
    %c0_55 = arith.constant 0 : index
    %c0_56 = arith.constant 0 : index
    %114 = vector.load %arg12[%c0_54, %c0_55, %c0_56] : memref<2x1x128xf32, #tpu.memory_space<vmem>>, vector<1x1x128xf32>
    %115 = vector.shape_cast %114 : vector<1x1x128xf32> to vector<1x128xf32>
    %116 = vector.broadcast %115 : vector<1x128xf32> to vector<16x128xf32>
    %117 = arith.addf %113, %116 : vector<16x128xf32>
    %cst_57 = arith.constant 0.000000e+00 : f32
    %118 = vector.broadcast %cst_57 : f32 to vector<16x128xf32>
    %119 = arith.maximumf %117, %118 : vector<16x128xf32>
    %c0_58 = arith.constant 0 : index
    %c0_59 = arith.constant 0 : index
    %c0_60 = arith.constant 0 : index
    %120 = vector.load %arg13[%c0_58, %c0_59, %c0_60] : memref<2x128x32xf32, #tpu.memory_space<vmem>>, vector<1x128x32xf32>
    %121 = vector.shape_cast %120 : vector<1x128x32xf32> to vector<128x32xf32>
    %cst_61 = arith.constant dense<0.000000e+00> : vector<16x32xf32>
    %122 = tpu.matmul %119, %121, %cst_61 {dimension_numbers = #tpu.dot_dimension_numbers<[1], [0], [0], [1], [0, 0, 1, 1], [], []>} : vector<16x128xf32>, vector<128x32xf32>, vector<16x32xf32> -> vector<16x32xf32>
    %123 = arith.addf %84, %122 : vector<16x32xf32>
    %c0_62 = arith.constant 0 : index
    %c0_63 = arith.constant 0 : index
    %c0_64 = arith.constant 0 : index
    %124 = vector.load %arg14[%c0_62, %c0_63, %c0_64] : memref<2x1x32xf32, #tpu.memory_space<vmem>>, vector<1x1x32xf32>
    %125 = vector.shape_cast %124 : vector<1x1x32xf32> to vector<1x32xf32>
    %126 = vector.broadcast %125 : vector<1x32xf32> to vector<16x32xf32>
    %127 = arith.addf %123, %126 : vector<16x32xf32>
    %c1 = arith.constant 1 : index
    %c0_65 = arith.constant 0 : index
    %c0_66 = arith.constant 0 : index
    %128 = vector.load %arg4[%c1, %c0_65, %c0_66] : memref<2x1x32xf32, #tpu.memory_space<vmem>>, vector<1x1x32xf32>
    %129 = vector.shape_cast %128 : vector<1x1x32xf32> to vector<1x32xf32>
    %c1_67 = arith.constant 1 : index
    %c0_68 = arith.constant 0 : index
    %c0_69 = arith.constant 0 : index
    %130 = vector.load %arg5[%c1_67, %c0_68, %c0_69] : memref<2x1x32xf32, #tpu.memory_space<vmem>>, vector<1x1x32xf32>
    %131 = vector.shape_cast %130 : vector<1x1x32xf32> to vector<1x32xf32>
    %cst_70 = arith.constant dense<0.000000e+00> : vector<16xf32>
    %132 = vector.multi_reduction <add>, %127, %cst_70 [1] : vector<16x32xf32> to vector<16xf32>
    %133 = vector.shape_cast %132 : vector<16xf32> to vector<16x1xf32>
    %cst_71 = arith.constant 3.200000e+01 : f32
    %134 = vector.broadcast %cst_71 : f32 to vector<16x1xf32>
    %135 = arith.divf %133, %134 : vector<16x1xf32>
    %136 = vector.broadcast %135 : vector<16x1xf32> to vector<16x32xf32>
    %137 = arith.subf %127, %136 : vector<16x32xf32>
    %138 = arith.mulf %137, %137 : vector<16x32xf32>
    %cst_72 = arith.constant dense<0.000000e+00> : vector<16xf32>
    %139 = vector.multi_reduction <add>, %138, %cst_72 [1] : vector<16x32xf32> to vector<16xf32>
    %140 = vector.shape_cast %139 : vector<16xf32> to vector<16x1xf32>
    %cst_73 = arith.constant 3.200000e+01 : f32
    %141 = vector.broadcast %cst_73 : f32 to vector<16x1xf32>
    %142 = arith.divf %140, %141 : vector<16x1xf32>
    %143 = vector.broadcast %135 : vector<16x1xf32> to vector<16x32xf32>
    %144 = arith.subf %127, %143 : vector<16x32xf32>
    %cst_74 = arith.constant 9.99999974E-6 : f32
    %145 = vector.broadcast %cst_74 : f32 to vector<16x1xf32>
    %146 = arith.addf %142, %145 : vector<16x1xf32>
    %147 = math.rsqrt %146 : vector<16x1xf32>
    %148 = vector.broadcast %147 : vector<16x1xf32> to vector<16x32xf32>
    %149 = arith.mulf %144, %148 : vector<16x32xf32>
    %150 = vector.broadcast %129 : vector<1x32xf32> to vector<16x32xf32>
    %151 = arith.mulf %149, %150 : vector<16x32xf32>
    %152 = vector.broadcast %131 : vector<1x32xf32> to vector<16x32xf32>
    %153 = arith.addf %151, %152 : vector<16x32xf32>
    %c1_75 = arith.constant 1 : index
    %c0_76 = arith.constant 0 : index
    %c0_77 = arith.constant 0 : index
    %154 = vector.load %arg6[%c1_75, %c0_76, %c0_77] : memref<2x32x96xf32, #tpu.memory_space<vmem>>, vector<1x32x96xf32>
    %155 = vector.shape_cast %154 : vector<1x32x96xf32> to vector<32x96xf32>
    %cst_78 = arith.constant dense<0.000000e+00> : vector<16x96xf32>
    %156 = tpu.matmul %153, %155, %cst_78 {dimension_numbers = #tpu.dot_dimension_numbers<[1], [0], [0], [1], [0, 0, 1, 1], [], []>} : vector<16x32xf32>, vector<32x96xf32>, vector<16x96xf32> -> vector<16x96xf32>
    %157 = vector.extract_strided_slice %156 {offsets = [0, 0], sizes = [16, 8], strides = [1, 1]} : vector<16x96xf32> to vector<16x8xf32>
    %158 = vector.extract_strided_slice %156 {offsets = [0, 32], sizes = [16, 8], strides = [1, 1]} : vector<16x96xf32> to vector<16x8xf32>
    "tpu.trace_start"() <{level = 10 : i32, message = "qd,kd->qk"}> : () -> ()
    %cst_79 = arith.constant dense<0.000000e+00> : vector<16x16xf32>
    %159 = tpu.matmul %157, %158, %cst_79 {dimension_numbers = #tpu.dot_dimension_numbers<[1], [1], [0], [0], [0, 0, 1, 0], [], []>} : vector<16x8xf32>, vector<16x8xf32>, vector<16x16xf32> -> vector<16x16xf32>
    "tpu.trace_stop"() : () -> ()
    %160 = vector.extract_strided_slice %156 {offsets = [0, 8], sizes = [16, 8], strides = [1, 1]} : vector<16x96xf32> to vector<16x8xf32>
    %161 = vector.extract_strided_slice %156 {offsets = [0, 40], sizes = [16, 8], strides = [1, 1]} : vector<16x96xf32> to vector<16x8xf32>
    "tpu.trace_start"() <{level = 10 : i32, message = "qd,kd->qk"}> : () -> ()
    %cst_80 = arith.constant dense<0.000000e+00> : vector<16x16xf32>
    %162 = tpu.matmul %160, %161, %cst_80 {dimension_numbers = #tpu.dot_dimension_numbers<[1], [1], [0], [0], [0, 0, 1, 0], [], []>} : vector<16x8xf32>, vector<16x8xf32>, vector<16x16xf32> -> vector<16x16xf32>
    "tpu.trace_stop"() : () -> ()
    %163 = vector.extract_strided_slice %156 {offsets = [0, 16], sizes = [16, 8], strides = [1, 1]} : vector<16x96xf32> to vector<16x8xf32>
    %164 = vector.extract_strided_slice %156 {offsets = [0, 48], sizes = [16, 8], strides = [1, 1]} : vector<16x96xf32> to vector<16x8xf32>
    "tpu.trace_start"() <{level = 10 : i32, message = "qd,kd->qk"}> : () -> ()
    %cst_81 = arith.constant dense<0.000000e+00> : vector<16x16xf32>
    %165 = tpu.matmul %163, %164, %cst_81 {dimension_numbers = #tpu.dot_dimension_numbers<[1], [1], [0], [0], [0, 0, 1, 0], [], []>} : vector<16x8xf32>, vector<16x8xf32>, vector<16x16xf32> -> vector<16x16xf32>
    "tpu.trace_stop"() : () -> ()
    %166 = vector.extract_strided_slice %156 {offsets = [0, 24], sizes = [16, 8], strides = [1, 1]} : vector<16x96xf32> to vector<16x8xf32>
    %167 = vector.extract_strided_slice %156 {offsets = [0, 56], sizes = [16, 8], strides = [1, 1]} : vector<16x96xf32> to vector<16x8xf32>
    "tpu.trace_start"() <{level = 10 : i32, message = "qd,kd->qk"}> : () -> ()
    %cst_82 = arith.constant dense<0.000000e+00> : vector<16x16xf32>
    %168 = tpu.matmul %166, %167, %cst_82 {dimension_numbers = #tpu.dot_dimension_numbers<[1], [1], [0], [0], [0, 0, 1, 0], [], []>} : vector<16x8xf32>, vector<16x8xf32>, vector<16x16xf32> -> vector<16x16xf32>
    "tpu.trace_stop"() : () -> ()
    %169 = tpu.concatenate %159, %162, %165, %168 in 0 : vector<16x16xf32>, vector<16x16xf32>, vector<16x16xf32>, vector<16x16xf32> -> vector<64x16xf32>
    %170 = arith.addf %169, %10 : vector<64x16xf32>
    %cst_83 = arith.constant dense<0xFF800000> : vector<64xf32>
    %171 = vector.multi_reduction <maximumf>, %170, %cst_83 [1] : vector<64x16xf32> to vector<64xf32>
    %172 = vector.shape_cast %171 : vector<64xf32> to vector<64x1xf32>
    %173 = vector.broadcast %172 : vector<64x1xf32> to vector<64x16xf32>
    %174 = arith.subf %170, %173 : vector<64x16xf32>
    %175 = math.exp %174 : vector<64x16xf32>
    %cst_84 = arith.constant dense<0.000000e+00> : vector<64xf32>
    %176 = vector.multi_reduction <add>, %175, %cst_84 [1] : vector<64x16xf32> to vector<64xf32>
    %177 = vector.shape_cast %176 : vector<64xf32> to vector<64x1xf32>
    %178 = tpu.reciprocal %177 {approx = true} : vector<64x1xf32> -> vector<64x1xf32>
    %179 = vector.broadcast %178 : vector<64x1xf32> to vector<64x16xf32>
    %180 = arith.mulf %175, %179 : vector<64x16xf32>
    %181 = vector.extract_strided_slice %156 {offsets = [0, 64], sizes = [16, 8], strides = [1, 1]} : vector<16x96xf32> to vector<16x8xf32>
    %182 = vector.extract_strided_slice %180 {offsets = [0, 0], sizes = [16, 16], strides = [1, 1]} : vector<64x16xf32> to vector<16x16xf32>
    %cst_85 = arith.constant dense<0.000000e+00> : vector<16x8xf32>
    %183 = tpu.matmul %182, %181, %cst_85 {dimension_numbers = #tpu.dot_dimension_numbers<[1], [0], [0], [1], [0, 0, 1, 1], [], []>} : vector<16x16xf32>, vector<16x8xf32>, vector<16x8xf32> -> vector<16x8xf32>
    %184 = vector.extract_strided_slice %156 {offsets = [0, 72], sizes = [16, 8], strides = [1, 1]} : vector<16x96xf32> to vector<16x8xf32>
    %185 = vector.extract_strided_slice %180 {offsets = [16, 0], sizes = [16, 16], strides = [1, 1]} : vector<64x16xf32> to vector<16x16xf32>
    %cst_86 = arith.constant dense<0.000000e+00> : vector<16x8xf32>
    %186 = tpu.matmul %185, %184, %cst_86 {dimension_numbers = #tpu.dot_dimension_numbers<[1], [0], [0], [1], [0, 0, 1, 1], [], []>} : vector<16x16xf32>, vector<16x8xf32>, vector<16x8xf32> -> vector<16x8xf32>
    %187 = vector.extract_strided_slice %156 {offsets = [0, 80], sizes = [16, 8], strides = [1, 1]} : vector<16x96xf32> to vector<16x8xf32>
    %188 = vector.extract_strided_slice %180 {offsets = [32, 0], sizes = [16, 16], strides = [1, 1]} : vector<64x16xf32> to vector<16x16xf32>
    %cst_87 = arith.constant dense<0.000000e+00> : vector<16x8xf32>
    %189 = tpu.matmul %188, %187, %cst_87 {dimension_numbers = #tpu.dot_dimension_numbers<[1], [0], [0], [1], [0, 0, 1, 1], [], []>} : vector<16x16xf32>, vector<16x8xf32>, vector<16x8xf32> -> vector<16x8xf32>
    %190 = vector.extract_strided_slice %156 {offsets = [0, 88], sizes = [16, 8], strides = [1, 1]} : vector<16x96xf32> to vector<16x8xf32>
    %191 = vector.extract_strided_slice %180 {offsets = [48, 0], sizes = [16, 16], strides = [1, 1]} : vector<64x16xf32> to vector<16x16xf32>
    %cst_88 = arith.constant dense<0.000000e+00> : vector<16x8xf32>
    %192 = tpu.matmul %191, %190, %cst_88 {dimension_numbers = #tpu.dot_dimension_numbers<[1], [0], [0], [1], [0, 0, 1, 1], [], []>} : vector<16x16xf32>, vector<16x8xf32>, vector<16x8xf32> -> vector<16x8xf32>
    %193 = tpu.concatenate %183, %186, %189, %192 in 1 : vector<16x8xf32>, vector<16x8xf32>, vector<16x8xf32>, vector<16x8xf32> -> vector<16x32xf32>
    %c1_89 = arith.constant 1 : index
    %c0_90 = arith.constant 0 : index
    %c0_91 = arith.constant 0 : index
    %194 = vector.load %arg7[%c1_89, %c0_90, %c0_91] : memref<2x32x32xf32, #tpu.memory_space<vmem>>, vector<1x32x32xf32>
    %195 = vector.shape_cast %194 : vector<1x32x32xf32> to vector<32x32xf32>
    %cst_92 = arith.constant dense<0.000000e+00> : vector<16x32xf32>
    %196 = tpu.matmul %193, %195, %cst_92 {dimension_numbers = #tpu.dot_dimension_numbers<[1], [0], [0], [1], [0, 0, 1, 1], [], []>} : vector<16x32xf32>, vector<32x32xf32>, vector<16x32xf32> -> vector<16x32xf32>
    %197 = arith.addf %127, %196 : vector<16x32xf32>
    %c1_93 = arith.constant 1 : index
    %c0_94 = arith.constant 0 : index
    %c0_95 = arith.constant 0 : index
    %198 = vector.load %arg8[%c1_93, %c0_94, %c0_95] : memref<2x1x32xf32, #tpu.memory_space<vmem>>, vector<1x1x32xf32>
    %199 = vector.shape_cast %198 : vector<1x1x32xf32> to vector<1x32xf32>
    %200 = vector.broadcast %199 : vector<1x32xf32> to vector<16x32xf32>
    %201 = arith.addf %197, %200 : vector<16x32xf32>
    %c1_96 = arith.constant 1 : index
    %c0_97 = arith.constant 0 : index
    %c0_98 = arith.constant 0 : index
    %202 = vector.load %arg9[%c1_96, %c0_97, %c0_98] : memref<2x1x32xf32, #tpu.memory_space<vmem>>, vector<1x1x32xf32>
    %203 = vector.shape_cast %202 : vector<1x1x32xf32> to vector<1x32xf32>
    %c1_99 = arith.constant 1 : index
    %c0_100 = arith.constant 0 : index
    %c0_101 = arith.constant 0 : index
    %204 = vector.load %arg10[%c1_99, %c0_100, %c0_101] : memref<2x1x32xf32, #tpu.memory_space<vmem>>, vector<1x1x32xf32>
    %205 = vector.shape_cast %204 : vector<1x1x32xf32> to vector<1x32xf32>
    %cst_102 = arith.constant dense<0.000000e+00> : vector<16xf32>
    %206 = vector.multi_reduction <add>, %201, %cst_102 [1] : vector<16x32xf32> to vector<16xf32>
    %207 = vector.shape_cast %206 : vector<16xf32> to vector<16x1xf32>
    %cst_103 = arith.constant 3.200000e+01 : f32
    %208 = vector.broadcast %cst_103 : f32 to vector<16x1xf32>
    %209 = arith.divf %207, %208 : vector<16x1xf32>
    %210 = vector.broadcast %209 : vector<16x1xf32> to vector<16x32xf32>
    %211 = arith.subf %201, %210 : vector<16x32xf32>
    %212 = arith.mulf %211, %211 : vector<16x32xf32>
    %cst_104 = arith.constant dense<0.000000e+00> : vector<16xf32>
    %213 = vector.multi_reduction <add>, %212, %cst_104 [1] : vector<16x32xf32> to vector<16xf32>
    %214 = vector.shape_cast %213 : vector<16xf32> to vector<16x1xf32>
    %cst_105 = arith.constant 3.200000e+01 : f32
    %215 = vector.broadcast %cst_105 : f32 to vector<16x1xf32>
    %216 = arith.divf %214, %215 : vector<16x1xf32>
    %217 = vector.broadcast %209 : vector<16x1xf32> to vector<16x32xf32>
    %218 = arith.subf %201, %217 : vector<16x32xf32>
    %cst_106 = arith.constant 9.99999974E-6 : f32
    %219 = vector.broadcast %cst_106 : f32 to vector<16x1xf32>
    %220 = arith.addf %216, %219 : vector<16x1xf32>
    %221 = math.rsqrt %220 : vector<16x1xf32>
    %222 = vector.broadcast %221 : vector<16x1xf32> to vector<16x32xf32>
    %223 = arith.mulf %218, %222 : vector<16x32xf32>
    %224 = vector.broadcast %203 : vector<1x32xf32> to vector<16x32xf32>
    %225 = arith.mulf %223, %224 : vector<16x32xf32>
    %226 = vector.broadcast %205 : vector<1x32xf32> to vector<16x32xf32>
    %227 = arith.addf %225, %226 : vector<16x32xf32>
    %c1_107 = arith.constant 1 : index
    %c0_108 = arith.constant 0 : index
    %c0_109 = arith.constant 0 : index
    %228 = vector.load %arg11[%c1_107, %c0_108, %c0_109] : memref<2x32x128xf32, #tpu.memory_space<vmem>>, vector<1x32x128xf32>
    %229 = vector.shape_cast %228 : vector<1x32x128xf32> to vector<32x128xf32>
    %cst_110 = arith.constant dense<0.000000e+00> : vector<16x128xf32>
    %230 = tpu.matmul %227, %229, %cst_110 {dimension_numbers = #tpu.dot_dimension_numbers<[1], [0], [0], [1], [0, 0, 1, 1], [], []>} : vector<16x32xf32>, vector<32x128xf32>, vector<16x128xf32> -> vector<16x128xf32>
    %c1_111 = arith.constant 1 : index
    %c0_112 = arith.constant 0 : index
    %c0_113 = arith.constant 0 : index
    %231 = vector.load %arg12[%c1_111, %c0_112, %c0_113] : memref<2x1x128xf32, #tpu.memory_space<vmem>>, vector<1x1x128xf32>
    %232 = vector.shape_cast %231 : vector<1x1x128xf32> to vector<1x128xf32>
    %233 = vector.broadcast %232 : vector<1x128xf32> to vector<16x128xf32>
    %234 = arith.addf %230, %233 : vector<16x128xf32>
    %cst_114 = arith.constant 0.000000e+00 : f32
    %235 = vector.broadcast %cst_114 : f32 to vector<16x128xf32>
    %236 = arith.maximumf %234, %235 : vector<16x128xf32>
    %c1_115 = arith.constant 1 : index
    %c0_116 = arith.constant 0 : index
    %c0_117 = arith.constant 0 : index
    %237 = vector.load %arg13[%c1_115, %c0_116, %c0_117] : memref<2x128x32xf32, #tpu.memory_space<vmem>>, vector<1x128x32xf32>
    %238 = vector.shape_cast %237 : vector<1x128x32xf32> to vector<128x32xf32>
    %cst_118 = arith.constant dense<0.000000e+00> : vector<16x32xf32>
    %239 = tpu.matmul %236, %238, %cst_118 {dimension_numbers = #tpu.dot_dimension_numbers<[1], [0], [0], [1], [0, 0, 1, 1], [], []>} : vector<16x128xf32>, vector<128x32xf32>, vector<16x32xf32> -> vector<16x32xf32>
    %240 = arith.addf %201, %239 : vector<16x32xf32>
    %c1_119 = arith.constant 1 : index
    %c0_120 = arith.constant 0 : index
    %c0_121 = arith.constant 0 : index
    %241 = vector.load %arg14[%c1_119, %c0_120, %c0_121] : memref<2x1x32xf32, #tpu.memory_space<vmem>>, vector<1x1x32xf32>
    %242 = vector.shape_cast %241 : vector<1x1x32xf32> to vector<1x32xf32>
    %243 = vector.broadcast %242 : vector<1x32xf32> to vector<16x32xf32>
    %244 = arith.addf %240, %243 : vector<16x32xf32>
    %c0_122 = arith.constant 0 : index
    %c0_123 = arith.constant 0 : index
    %245 = vector.load %arg15[%c0_122, %c0_123] : memref<32x128xf32, #tpu.memory_space<vmem>>, vector<32x128xf32>
    %cst_124 = arith.constant dense<0.000000e+00> : vector<16x128xf32>
    %246 = tpu.matmul %244, %245, %cst_124 {dimension_numbers = #tpu.dot_dimension_numbers<[1], [0], [0], [1], [0, 0, 1, 1], [], []>} : vector<16x32xf32>, vector<32x128xf32>, vector<16x128xf32> -> vector<16x128xf32>
    %c0_125 = arith.constant 0 : index
    %c0_126 = arith.constant 0 : index
    %247 = vector.load %arg16[%c0_125, %c0_126] : memref<1x128xf32, #tpu.memory_space<vmem>>, vector<1x128xf32>
    %248 = vector.broadcast %247 : vector<1x128xf32> to vector<16x128xf32>
    %249 = arith.addf %246, %248 : vector<16x128xf32>
    %c0_127 = arith.constant 0 : index
    %c0_128 = arith.constant 0 : index
    %250 = vector.load %arg17[%c0_127, %c0_128] : memref<16x128xf32, #tpu.memory_space<vmem>>, vector<16x128xf32>
    tpu.vector_store %arg17[%c0_127, %c0_128], %249 {strides = array<i32>} : memref<16x128xf32, #tpu.memory_space<vmem>>, vector<16x128xf32>,
    return
  }
}

</mosaic_0001>

<bundles_post_ra>
// kernel: tpu_custom_call.1
= control target key start
LH: loop header
LB: loop body
LE: loop exit
PB: predicated region body
PF: predicated region fallthrough
CT: control target
= control target key end

     0   :  { %s4372_s0 = inlined_call_operand.vmem [shape: s32[16,1], index: 0, kind: input, shape index: {}]   ;;  %s4373_s1 = inlined_call_operand.vmem [shape: f32[16,32], index: 1, kind: input, shape index: {}]   ;;  %s4374_s2 = inlined_call_operand.vmem [shape: f32[64,16], index: 2, kind: input, shape index: {}]   ;;  %s4375_s3 = inlined_call_operand.vmem [shape: f32[128,32], index: 3, kind: input, shape index: {}]   ;;  %s4376_s4 = inlined_call_operand.vmem [shape: f32[2,1,32], index: 4, kind: input, shape index: {}]   ;;  %s4377_s5 = inlined_call_operand.vmem [shape: f32[2,1,32], index: 5, kind: input, shape index: {}]   ;;  %s4378_s6 = inlined_call_operand.vmem [shape: f32[2,32,96], index: 6, kind: input, shape index: {}]   ;;  %s4379_s7 = inlined_call_operand.vmem [shape: f32[2,32,32], index: 7, kind: input, shape index: {}]   ;;  %s4380_s8 = inlined_call_operand.vmem [shape: f32[2,1,32], index: 8, kind: input, shape index: {}]   ;;  %s4381_s9 = inlined_call_operand.vmem [shape: f32[2,1,32], index: 9, kind: input, shape index: {}]   ;;  %s4382_s10 = inlined_call_operand.vmem [shape: f32[2,1,32], index: 10, kind: input, shape index: {}]   ;;  %s4383_s11 = inlined_call_operand.vmem [shape: f32[2,32,128], index: 11, kind: input, shape index: {}]   ;;  %s4384_s12 = inlined_call_operand.vmem [shape: f32[2,1,128], index: 12, kind: input, shape index: {}]   ;;  %s4385_s13 = inlined_call_operand.vmem [shape: f32[2,128,32], index: 13, kind: input, shape index: {}]   ;;  %s4386_s14 = inlined_call_operand.vmem [shape: f32[2,1,32], index: 14, kind: input, shape index: {}]   ;;  %s4387_s15 = inlined_call_operand.vmem [shape: f32[32,128], index: 15, kind: input, shape index: {}]   ;;  %s4388_s16 = inlined_call_operand.vmem [shape: f32[1,128], index: 16, kind: input, shape index: {}]   ;;  %s4389_s17 = inlined_call_operand.hbm [shape: f32[16,128], index: 17, kind: output, shape index: {}]  }
   0x1   :  { %4402 = sst [smem:[#allocation5_spill]] %s4372_s0 }
   0x2   :  { %4403 = sst [smem:[#allocation6_spill]] %s4373_s1 }
   0x3   :  { %s4404_s26 = sld [smem:[#allocation5_spill]]  ;;  %v88_v1 = vld [vmem:[%s4375_s3 + $0x78] sm:$0xff]  ;;  %v3593_v2 = vmov 0   ;;  %v87_v3 = vld [vmem:[%s4375_s3 + $0x70] sm:$0xff]  ;;  %v86_v4 = vld [vmem:[%s4375_s3 + $0x68] sm:$0xff] }
   0x4   :  { %3490 = vset.pattern.permute.xlu0 %v3593_v2  ;;  %3178 = vmatprep.subr.mxu0 %v88_v1  ;;  %v85_v6 = vld [vmem:[%s4375_s3 + $0x60] sm:$0xff]  ;;  %v84_v7 = vld [vmem:[%s4375_s3 + $0x58] sm:$0xff] }
   0x5   :  { %3179 = vmatpush3.msra.mxu0 %v88_v1 }
   0x6   :  { %3180 = vmatprep.subr.mxu0 %v87_v3 }
   0x7   :  { %3181 = vmatpush3.msra.mxu0 %v87_v3 }
   0x8   :  { %3182 = vmatprep.subr.mxu0 %v86_v4 }
   0x9   :  { %v57_v0 = vld [vmem:[%s4404_s26] sm:$0xff]  ;;  %v58_v5 = vld [vmem:[%s4404_s26 + $0x8] sm:$0xff]  ;;  %3183 = vmatpush3.msra.mxu0 %v86_v4 }
   0xa   :  { %62 = vperm.xlu0 %3490, %v57_v0  }
   0xe   :  { %65 = vperm.xlu0 %3490, %v58_v5  }
   0xf   :  { %22 = vsyncpa [#allocation3], 0  ;;  %3184 = vmatprep.subr.mxu0 %v85_v6  ;;  %v83_v8 = vld [vmem:[%s4375_s3 + $0x50] sm:$0xff]  ;;  %v82_v9 = vld [vmem:[%s4375_s3 + $0x48] sm:$0xff]  ;;  %v59_v19 = vlaneseq  ;;  %v3594_v22 = vmov 1.0   ;;  %s4405_s19 = sld [smem:[#allocation6_spill]] }
  0x10   :  { %3185 = vmatpush3.msra.mxu0 %v85_v6  ;;  %v81_v10 = vld [vmem:[%s4375_s3 + $0x40] sm:$0xff]  ;;  %v80_v11 = vld [vmem:[%s4375_s3 + $0x38] sm:$0xff]  ;;  %v79_v12 = vld [vmem:[%s4375_s3 + $0x30] sm:$0xff]  ;;  %vm176_vm2 = vcmask 261120   ;;  %vm311_vm3 = vcmask 64512   ;;  %s3595_s18 = smov 96  }
  0x11   :  { %3186 = vmatprep.subr.mxu0 %v84_v7  ;;  %v78_v13 = vld [vmem:[%s4375_s3 + $0x28] sm:$0xff]  ;;  %v77_v14 = vld [vmem:[%s4375_s3 + $0x20] sm:$0xff]  ;;  %v76_v15 = vld [vmem:[%s4375_s3 + $0x18] sm:$0xff]  ;;  %v60_v20 = vand.u32 127, %v59_v19  ;;  %s3597_s1 = smov 88   ;;  %s3599_s20 = smov 104  }
  0x12   :  { %3187 = vmatpush3.msra.mxu0 %v84_v7  ;;  %v75_v16 = vld [vmem:[%s4375_s3 + $0x10] sm:$0xff]  ;;  %v74_v17 = vld [vmem:[%s4375_s3 + $0x8] sm:$0xff]  ;;  %v73_v18 = vld [vmem:[%s4375_s3] sm:$0xff]  ;;  %s3598_s3 = smov 112   ;;  %s3600_s21 = smov 80   ;;  %vm676_vm4 = vcmask 130048  }
  0x13   :  { %3188 = vmatprep.subr.mxu0 %v83_v8  ;;  %v223_v42 = vld [vmem:[%s4378_s6 + $0x18] sm:$0xff]  ;;  %v222_v43 = vld [vmem:[%s4378_s6 + $0x10] sm:$0xff]  ;;  %v221_v44 = vld [vmem:[%s4378_s6 + $0x8] sm:$0xff]  ;;  %s3601_s22 = smov 72   ;;  %s3602_s0 = smov 64   ;;  %vm1141_vm5 = vcmask 195584  }
  0x14   :  { %3189 = vmatpush3.msra.mxu0 %v83_v8  ;;  %3213 = vmatprep.subr.mxu1 %v223_v42  ;;  %v220_v45 = vld [vmem:[%s4378_s6] sm:$0xff]  ;;  %s4400_s30 = smov 48   ;;  %s4392_s23 = smov 40  }
  0x15   :  { %3190 = vmatprep.subr.mxu0 %v82_v9  ;;  %v89_v25 = vld [vmem:[%s4405_s19] sm:$0xff]  ;;  %v90_v26 = vld [vmem:[%s4405_s19 + $0x8] sm:$0xff]  ;;  %3214 = vmatpush3.msra.mxu1 %v223_v42  ;;  %s3596_s19 = smov 120   ;;  %v3901_v42 = vld [vmem:[%s4374_s2 + $0x30] sm:$0xff]  ;;  %s4398_s28 = smov 8  }
  0x16   :  { %3191 = vmatpush3.msra.mxu0 %v82_v9  ;;  %3215 = vmatprep.subr.mxu1 %v222_v43  ;;  %v2906_v53 = vld [vmem:[%s4376_s4] ss:$0 sm:$0xff]  ;;  %s4396_s26 = smov 16   ;;  %s4394_s27 = smov 24  }
  0x17   :  { %3192 = vmatprep.subr.mxu0 %v81_v10  ;;  %3216 = vmatpush3.msra.mxu1 %v222_v43  ;;  %v2907_v55 = vld [vmem:[%s4377_s5] ss:$0 sm:$0xff]  ;;  %s4409_s29 = smov 16  }
  0x18   :  { %3193 = vmatpush3.msra.mxu0 %v81_v10  ;;  %3217 = vmatprep.subr.mxu1 %v221_v44 }
  0x19   :  { %3194 = vmatprep.subr.mxu0 %v80_v11  ;;  %3218 = vmatpush3.msra.mxu1 %v221_v44 }
  0x1a   :  { %3195 = vmatpush3.msra.mxu0 %v80_v11  ;;  %3219 = vmatprep.subr.mxu1 %v220_v45 }
  0x1b   :  { %3196 = vmatprep.subr.mxu0 %v79_v12  ;;  %3220 = vmatpush3.msra.mxu1 %v220_v45 }
  0x1c   :  { %3197 = vmatpush3.msra.mxu0 %v79_v12 }
  0x1d   :  { %3198 = vmatprep.subr.mxu0 %v78_v13 }
  0x1e   :  { %3199 = vmatpush3.msra.mxu0 %v78_v13 }
  0x1f   :  { %3200 = vmatprep.subr.mxu0 %v77_v14 }
  0x20   :  { %3201 = vmatpush3.msra.mxu0 %v77_v14  ;;  %v3854_v14 = vld [vmem:[%s4374_s2 + $0x8] sm:$0xff] }
  0x21   :  { %3202 = vmatprep.subr.mxu0 %v76_v15 }
  0x22   :  { %3203 = vmatpush3.msra.mxu0 %v76_v15 }
  0x23   :  { %3204 = vmatprep.subr.mxu0 %v75_v16 }
  0x24   :  { %3205 = vmatpush3.msra.mxu0 %v75_v16  ;;  %v3859_v16 = vld [vmem:[%s4374_s2] sm:$0xff] }
  0x25   :  { %3206 = vmatprep.subr.mxu0 %v74_v17 }
  0x26   :  { %3207 = vmatpush3.msra.mxu0 %v74_v17 }
  0x27   :  { %3208 = vmatprep.subr.mxu0 %v73_v18 }
  0x28   :  { %3209 = vmatpush3.msra.mxu0 %v73_v18 }
  0x85   :  { %v63_v21 = vpop.permute.xlu0 %62 }
  0x86   :  { %vm67_vm0 = vcmp.eq.s32.totalorder %v60_v20, %v63_v21 }
  0x87   :  { %3210 = vmatprep.mubr.msk.f32.mxu0 %vm67_vm0, %v3594_v22 }
  0x89   :  { %v66_v23 = vpop.permute.xlu0 %65 }
  0x8a   :  { %vm68_vm1 = vcmp.eq.s32.totalorder %v60_v20, %v66_v23  ;;  %v3868_v23 = vld [vmem:[%s4374_s2 + $0x10] sm:$0xff] }
  0x8b   :  { %3211 = vmatmul.mubr.msk.f32.vlgmr.msra.gmra.mxu0 %vm68_vm1, %v3594_v22 }
 0x14b   :  { %v3212_v24 = vpop.f32.mrf.mxu0 }
 0x14c   :  { %v3763_v29 = vadd.f32 %v3212_v24, %v90_v26  ;;  %v3873_v24 = vld [vmem:[%s4374_s2 + $0x18] sm:$0xff] }
 0x14d   :  { %v157_v27 = vpop.f32.mrf.mxu0 }
 0x14e   :  { %v3761_v28 = vadd.f32 %v157_v27, %v89_v25  ;;  %v180_v31 = vsel %vm176_vm2, %v3763_v29, 0.0 }
 0x150   :  { %v177_v30 = vsel %vm176_vm2, %v3761_v28, 0.0 }
 0x151   :  { %178 = vadd.xlane.f32.xlu1 %v177_v30 }
 0x155   :  { %181 = vadd.xlane.f32.xlu1 %v180_v31 }
 0x1da   :  { %v179_v32 = vpop.xlane.xlu1 %178 }
 0x1db   :  { %v184_v33 = vmul.f32 0.03125, %v179_v32  ;;  %v3882_v32 = vld [vmem:[%s4374_s2 + $0x28] sm:$0xff] }
 0x1dd   :  { %v186_v34 = vsub.f32 %v3761_v28, %v184_v33 }
 0x1de   :  { %v182_v35 = vpop.xlane.xlu1 %181 }
 0x1df   :  { %v185_v36 = vmul.f32 0.03125, %v182_v35  ;;  %v188_v37 = vmul.f32 %v186_v34, %v186_v34 }
 0x1e1   :  { %v187_v38 = vsub.f32 %v3763_v29, %v185_v36  ;;  %v190_v39 = vsel %vm176_vm2, %v188_v37, 0.0 }
 0x1e2   :  { %191 = vadd.xlane.f32.xlu0 %v190_v39 }
 0x1e3   :  { %v189_v40 = vmul.f32 %v187_v38, %v187_v38 }
 0x1e5   :  { %v193_v41 = vsel %vm176_vm2, %v189_v40, 0.0  ;;  %v3896_v40 = vld [vmem:[%s4374_s2 + $0x38] sm:$0xff] }
 0x1e6   :  { %194 = vadd.xlane.f32.xlu1 %v193_v41 }
 0x26b   :  { %v192_v46 = vpop.xlane.xlu0 %191 }
 0x26c   :  { %v196_v47 = vmul.f32 0.03125, %v192_v46 }
 0x26e   :  { %v198_v48 = vadd.f32 1e-05, %v196_v47 }
 0x26f   :  { %v195_v49 = vpop.xlane.xlu1 %194 }
 0x270   :  { %3491 = vrsqrt.f32 %v198_v48  ;;  %v197_v50 = vmul.f32 0.03125, %v195_v49 }
 0x272   :  { %v199_v51 = vadd.f32 1e-05, %v197_v50 }
 0x274   :  { %3493 = vrsqrt.f32 %v199_v51 }
 0x27d   :  { %v3492_v52 = vpop.eup %3491 }
 0x27e   :  { %v202_v54 = vmul.f32 %v3492_v52, %v186_v34  ;;  %v3887_v34 = vld [vmem:[%s4374_s2 + $0x20] sm:$0xff]  ;;  %s3603_s2 = smov 56  }
 0x280   :  { %v210_v56 = vmul.f32 %v2906_v53, %v202_v54 }
 0x281   :  { %v3494_v57 = vpop.eup %3493 }
 0x282   :  { %v203_v58 = vmul.f32 %v3494_v57, %v187_v38  ;;  %v218_v59 = vadd.f32 %v2907_v55, %v210_v56 }
 0x284   :  { %v211_v60 = vmul.f32 %v2906_v53, %v203_v58  ;;  %3221 = vmatprep.mubr.msk.f32.mxu1 %vm176_vm2, %v218_v59 }
 0x286   :  { %v219_v61 = vadd.f32 %v2907_v55, %v211_v60 }
 0x288   :  { %3222 = vmatmul.mubr.msk.f32.vlgmr.msra.gmra.mxu1 %vm176_vm2, %v219_v61 }
 0x348   :  { %v3793_v62 = vpop.f32.mrf.mxu1 }
 0x349   :  { %309 = vrot.lane.b32.xlu1 %v3793_v62, %s3595_s18 }
 0x34a   :  { %v3797_v63 = vpop.f32.mrf.mxu1 }
 0x34b   :  { %395 = vrot.lane.b32.xlu0 %v3797_v63, %s3596_s19  ;;  %3228 = vmatprep.mubr.msk.f32.mxu1 %vm311_vm3, %v3797_v63 }
 0x34d   :  { %401 = vrot.lane.b32.xlu1 %v3793_v62, %s3597_s1 }
 0x34f   :  { %488 = vrot.lane.b32.xlu0 %v3793_v62, %s3598_s3 }
 0x351   :  { %307 = vrot.lane.b32.xlu1 %v3797_v63, %s3595_s18 }
 0x353   :  { %577 = vrot.lane.b32.xlu0 %v3797_v63, %s3599_s20 }
 0x355   :  { %399 = vrot.lane.b32.xlu1 %v3797_v63, %s3597_s1 }
 0x359   :  { %492 = vrot.lane.b32.xlu1 %v3793_v62, %s3600_s21 }
 0x35d   :  { %397 = vrot.lane.b32.xlu1 %v3793_v62, %s3596_s19 }
 0x361   :  { %583 = vrot.lane.b32.xlu1 %v3793_v62, %s3601_s22 }
 0x365   :  { %490 = vrot.lane.b32.xlu1 %v3797_v63, %s3600_s21 }
 0x369   :  { %486 = vrot.lane.b32.xlu1 %v3797_v63, %s3598_s3 }
 0x36d   :  { %581 = vrot.lane.b32.xlu1 %v3797_v63, %s3601_s22 }
 0x371   :  { %579 = vrot.lane.b32.xlu1 %v3793_v62, %s3599_s20 }
 0x3bb   :  { %v310_v0 = vpop.permute.xlu1 %309 }
 0x3bc   :  { %3224 = vmatprep.subr.msk.mxu1 %vm311_vm3, %v310_v0 }
 0x3bd   :  { %3225 = vmatpush3.xpose.msk.msra.mxu1 %vm311_vm3, %v310_v0  ;;  %v396_v4 = vpop.permute.xlu0 %395 }
 0x3bf   :  { %v402_v1 = vpop.permute.xlu1 %401 }
 0x3c1   :  { %v489_v8 = vpop.permute.xlu0 %488 }
 0x3c3   :  { %v308_v2 = vpop.permute.xlu1 %307 }
 0x3c4   :  { %3226 = vmatprep.subr.msk.mxu1 %vm311_vm3, %v308_v2 }
 0x3c5   :  { %3227 = vmatpush3.xpose.msk.msra.mxu1 %vm311_vm3, %v308_v2  ;;  %v578_v11 = vpop.permute.xlu0 %577 }
 0x3c6   :  { %3231 = vmatprep.subr.msk.mxu1 %vm311_vm3, %v402_v1 }
 0x3c7   :  { %v400_v3 = vpop.permute.xlu1 %399 }
 0x3c8   :  { %3229 = vmatmul.mubr.msk.f32.vlgmr.msra.gmra.mxu1 %vm311_vm3, %v3793_v62 }
 0x3c9   :  { %3232 = vmatpush3.xpose.msk.msra.mxu1 %vm311_vm3, %v402_v1  ;;  %3235 = vmatprep.mubr.msk.f32.mxu1 %vm311_vm3, %v396_v4 }
 0x3ca   :  { %3233 = vmatprep.subr.msk.mxu1 %vm311_vm3, %v400_v3 }
 0x3cb   :  { %v493_v5 = vpop.permute.xlu1 %492 }
 0x3cd   :  { %3234 = vmatpush3.xpose.msk.msra.mxu1 %vm311_vm3, %v400_v3 }
 0x3ce   :  { %3238 = vmatprep.subr.msk.mxu1 %vm311_vm3, %v493_v5 }
 0x3cf   :  { %v398_v6 = vpop.permute.xlu1 %397 }
 0x3d0   :  { %3236 = vmatmul.mubr.msk.f32.vlgmr.msra.gmra.mxu1 %vm311_vm3, %v398_v6 }
 0x3d1   :  { %3239 = vmatpush3.xpose.msk.msra.mxu1 %vm311_vm3, %v493_v5 }
 0x3d3   :  { %v584_v7 = vpop.permute.xlu1 %583 }
 0x3d7   :  { %v491_v9 = vpop.permute.xlu1 %490 }
 0x3d8   :  { %3240 = vmatprep.subr.msk.mxu1 %vm311_vm3, %v491_v9 }
 0x3d9   :  { %3241 = vmatpush3.xpose.msk.msra.mxu1 %vm311_vm3, %v491_v9 }
 0x3da   :  { %3245 = vmatprep.subr.msk.mxu1 %vm311_vm3, %v584_v7 }
 0x3db   :  { %v487_v10 = vpop.permute.xlu1 %486 }
 0x3dc   :  { %3242 = vmatprep.mubr.msk.f32.mxu1 %vm311_vm3, %v487_v10 }
 0x3dd   :  { %3243 = vmatmul.mubr.msk.f32.vlgmr.msra.gmra.mxu1 %vm311_vm3, %v489_v8 }
 0x3de   :  { %3246 = vmatpush3.xpose.msk.msra.mxu1 %vm311_vm3, %v584_v7  ;;  %3249 = vmatprep.mubr.msk.f32.mxu1 %vm311_vm3, %v578_v11 }
 0x3df   :  { %v582_v12 = vpop.permute.xlu1 %581 }
 0x3e0   :  { %3247 = vmatprep.subr.msk.mxu1 %vm311_vm3, %v582_v12 }
 0x3e2   :  { %3248 = vmatpush3.xpose.msk.msra.mxu1 %vm311_vm3, %v582_v12 }
 0x3e3   :  { %v580_v13 = vpop.permute.xlu1 %579 }
 0x3e5   :  { %3250 = vmatmul.mubr.msk.f32.vlgmr.msra.gmra.mxu1 %vm311_vm3, %v580_v13 }
 0x488   :  { %v3230_v15 = vpop.f32.mrf.mxu1 }
 0x489   :  { %v669_v17 = vadd.f32 %v3230_v15, %v3854_v14 }
 0x48a   :  { %v386_v18 = vpop.f32.mrf.mxu1 }
 0x48b   :  { %v668_v19 = vadd.f32 %v386_v18, %v3859_v16  ;;  %v680_v20 = vsel %vm676_vm4, %v669_v17, -inf }
 0x48c   :  { %681 = vmax.xlane.f32.xlu1 %v680_v20 }
 0x48d   :  { %v677_v21 = vsel %vm676_vm4, %v668_v19, -inf }
 0x48e   :  { %678 = vmax.xlane.f32.xlu0 %v677_v21 }
 0x490   :  { %v3237_v22 = vpop.f32.mrf.mxu1 }
 0x491   :  { %v671_v27 = vadd.f32 %v3237_v22, %v3873_v24 }
 0x492   :  { %v477_v25 = vpop.f32.mrf.mxu1 }
 0x493   :  { %v670_v26 = vadd.f32 %v477_v25, %v3868_v23  ;;  %v686_v31 = vsel %vm676_vm4, %v671_v27, -inf }
 0x495   :  { %v683_v30 = vsel %vm676_vm4, %v670_v26, -inf }
 0x496   :  { %684 = vmax.xlane.f32.xlu0 %v683_v30 }
 0x49a   :  { %687 = vmax.xlane.f32.xlu0 %v686_v31 }
 0x49d   :  { %v3244_v33 = vpop.f32.mrf.mxu1 }
 0x49e   :  { %v673_v35 = vadd.f32 %v3244_v33, %v3882_v32 }
 0x49f   :  { %v568_v36 = vpop.f32.mrf.mxu1 }
 0x4a0   :  { %v672_v37 = vadd.f32 %v568_v36, %v3887_v34  ;;  %v692_v38 = vsel %vm676_vm4, %v673_v35, -inf }
 0x4a1   :  { %693 = vmax.xlane.f32.xlu0 %v692_v38 }
 0x4a2   :  { %v689_v39 = vsel %vm676_vm4, %v672_v37, -inf }
 0x4a3   :  { %690 = vmax.xlane.f32.xlu1 %v689_v39 }
 0x4a5   :  { %v3251_v41 = vpop.f32.mrf.mxu1 }
 0x4a6   :  { %v675_v43 = vadd.f32 %v3251_v41, %v3896_v40 }
 0x4a7   :  { %v659_v44 = vpop.f32.mrf.mxu1 }
 0x4a8   :  { %v674_v45 = vadd.f32 %v659_v44, %v3901_v42  ;;  %v698_v46 = vsel %vm676_vm4, %v675_v43, -inf }
 0x4a9   :  { %699 = vmax.xlane.f32.xlu0 %v698_v46 }
 0x4aa   :  { %v695_v47 = vsel %vm676_vm4, %v674_v45, -inf }
 0x4ab   :  { %696 = vmax.xlane.f32.xlu1 %v695_v47 }
 0x4bc   :  { %767 = vrot.lane.b32.xlu1 %v3793_v62, %s3602_s0 }
 0x4bf   :  { %765 = vrot.lane.b32.xlu0 %v3797_v63, %s3602_s0 }
 0x4c0   :  { %854 = vrot.lane.b32.xlu1 %v3793_v62, %s3603_s2 }
 0x4c3   :  { %941 = vrot.lane.b32.xlu0 %v3793_v62, %s4400_s30 }
 0x4c4   :  { %852 = vrot.lane.b32.xlu1 %v3797_v63, %s3603_s2 }
 0x4c8   :  { %939 = vrot.lane.b32.xlu1 %v3797_v63, %s4400_s30 }
 0x515   :  { %v682_v48 = vpop.xlane.xlu1 %681 }
 0x516   :  { %v702_v49 = vsub.f32 %v669_v17, %v682_v48 }
 0x517   :  { %v679_v50 = vpop.xlane.xlu0 %678 }
 0x518   :  { %v711_v51 = vmul.f32 1.442695, %v702_v49  ;;  %v701_v52 = vsub.f32 %v668_v19, %v679_v50 }
 0x51a   :  { %3495 = vpow2.f32 %v711_v51  ;;  %v709_v53 = vmul.f32 1.442695, %v701_v52 }
 0x51c   :  { %3497 = vpow2.f32 %v709_v53 }
 0x51f   :  { %v685_v54 = vpop.xlane.xlu0 %684 }
 0x520   :  { %v703_v55 = vsub.f32 %v670_v26, %v685_v54 }
 0x522   :  { %v713_v56 = vmul.f32 1.442695, %v703_v55 }
 0x523   :  { %v688_v57 = vpop.xlane.xlu0 %687 }
 0x524   :  { %3499 = vpow2.f32 %v713_v56  ;;  %v704_v58 = vsub.f32 %v671_v27, %v688_v57 }
 0x526   :  { %v715_v59 = vmul.f32 1.442695, %v704_v58 }
 0x527   :  { %v3919_v60 = vpop.eup %3495 }
 0x528   :  { %3501 = vpow2.f32 %v715_v59  ;;  %v728_v61 = vsel %vm676_vm4, %v3919_v60, 0.0 }
 0x529   :  { %v3498_v0 = vpop.eup %3497  ;;  %729 = vadd.xlane.f32.xlu0 %v728_v61 }
 0x52a   :  { %v694_v1 = vpop.xlane.xlu0 %693  ;;  %v725_v2 = vsel %vm676_vm4, %v3498_v0, 0.0 }
 0x52b   :  { %v706_v3 = vsub.f32 %v673_v35, %v694_v1  ;;  %726 = vadd.xlane.f32.xlu1 %v725_v2 }
 0x52c   :  { %v691_v4 = vpop.xlane.xlu1 %690 }
 0x52d   :  { %v719_v5 = vmul.f32 1.442695, %v706_v3  ;;  %v705_v6 = vsub.f32 %v672_v37, %v691_v4 }
 0x52f   :  { %3503 = vpow2.f32 %v719_v5  ;;  %v717_v7 = vmul.f32 1.442695, %v705_v6 }
 0x531   :  { %v3924_v8 = vpop.eup %3499  ;;  %3505 = vpow2.f32 %v717_v7  ;;  %v1147_v7 = vld [vmem:[%s4379_s7 + $0x18] sm:$0xff] }
 0x532   :  { %v700_v9 = vpop.xlane.xlu0 %699  ;;  %v731_v10 = vsel %vm676_vm4, %v3924_v8, 0.0  ;;  %3280 = vmatprep.subr.mxu0 %v1147_v7 }
 0x533   :  { %v708_v11 = vsub.f32 %v675_v43, %v700_v9  ;;  %732 = vadd.xlane.f32.xlu1 %v731_v10  ;;  %3281 = vmatpush3.msra.mxu0 %v1147_v7  ;;  %v1145_v10 = vld [vmem:[%s4379_s7 + $0x8] sm:$0xff] }
 0x534   :  { %v697_v12 = vpop.xlane.xlu1 %696 }
 0x535   :  { %v3502_v13 = vpop.eup %3501  ;;  %v723_v15 = vmul.f32 1.442695, %v708_v11  ;;  %v707_v17 = vsub.f32 %v674_v45, %v697_v12  ;;  %v1144_v11 = vld [vmem:[%s4379_s7] sm:$0xff] }
 0x536   :  { %v734_v18 = vsel %vm676_vm4, %v3502_v13, 0.0  ;;  %v766_v21 = vpop.permute.xlu0 %765 }
 0x537   :  { %3507 = vpow2.f32 %v723_v15  ;;  %v721_v19 = vmul.f32 1.442695, %v707_v17  ;;  %735 = vadd.xlane.f32.xlu0 %v734_v18 }
 0x538   :  { %v768_v20 = vpop.permute.xlu1 %767 }
 0x539   :  { %3509 = vpow2.f32 %v721_v19  ;;  %3252 = vmatprep.subr.mxu1 %v768_v20 }
 0x53a   :  { %3253 = vmatpush3.msra.mxu1 %v768_v20  ;;  %v942_v38 = vpop.permute.xlu0 %941 }
 0x53b   :  { %3254 = vmatprep.subr.mxu1 %v766_v21 }
 0x53c   :  { %v3504_v22 = vpop.eup %3503  ;;  %3255 = vmatpush3.msra.mxu1 %v766_v21  ;;  %v855_v25 = vpop.permute.xlu1 %854 }
 0x53d   :  { %3259 = vmatprep.subr.mxu1 %v855_v25  ;;  %v740_v26 = vsel %vm676_vm4, %v3504_v22, 0.0 }
 0x53e   :  { %v3506_v27 = vpop.eup %3505  ;;  %741 = vadd.xlane.f32.xlu0 %v740_v26 }
 0x53f   :  { %v737_v30 = vsel %vm676_vm4, %v3506_v27, 0.0 }
 0x540   :  { %738 = vadd.xlane.f32.xlu1 %v737_v30  ;;  %v853_v37 = vpop.permute.xlu1 %852 }
 0x544   :  { %v3508_v31 = vpop.eup %3507  ;;  %v940_v39 = vpop.permute.xlu1 %939 }
 0x545   :  { %v746_v33 = vsel %vm676_vm4, %v3508_v31, 0.0 }
 0x546   :  { %v3510_v35 = vpop.eup %3509  ;;  %747 = vadd.xlane.f32.xlu0 %v746_v33 }
 0x547   :  { %v743_v36 = vsel %vm676_vm4, %v3510_v35, 0.0 }
 0x548   :  { %744 = vadd.xlane.f32.xlu1 %v743_v36 }
 0x559   :  { %1026 = vrot.lane.b32.xlu1 %v3797_v63, %s4392_s23 }
 0x55c   :  { %1028 = vrot.lane.b32.xlu0 %v3793_v62, %s4392_s23 }
 0x5b2   :  { %v730_v41 = vpop.xlane.xlu0 %729 }
 0x5b3   :  { %3511 = vrcp.f32 %v730_v41 }
 0x5b4   :  { %v727_v43 = vpop.xlane.xlu1 %726 }
 0x5b5   :  { %3513 = vrcp.f32 %v727_v43 }
 0x5bc   :  { %v733_v44 = vpop.xlane.xlu1 %732 }
 0x5bd   :  { %3515 = vrcp.f32 %v733_v44 }
 0x5c0   :  { %v736_v45 = vpop.xlane.xlu0 %735  ;;  %v3512_v46 = vpop.eup %3511 }
 0x5c1   :  { %3517 = vrcp.f32 %v736_v45  ;;  %v758_v49 = vmul.f32 %v3512_v46, %v3919_v60 }
 0x5c2   :  { %v3514_v47 = vpop.eup %3513 }
 0x5c3   :  { %v757_v48 = vmul.f32 %v3514_v47, %v3498_v0 }
 0x5c5   :  { %3256 = vmatprep.mubr.msk.f32.mxu1 %vm676_vm4, %v757_v48 }
 0x5c6   :  { %3257 = vmatmul.mubr.msk.f32.vlgmr.msra.gmra.mxu1 %vm676_vm4, %v758_v49 }
 0x5c7   :  { %3260 = vmatpush3.msra.mxu1 %v855_v25  ;;  %v742_v62 = vpop.xlane.xlu0 %741 }
 0x5c8   :  { %3261 = vmatprep.subr.mxu1 %v853_v37  ;;  %3519 = vrcp.f32 %v742_v62 }
 0x5c9   :  { %3262 = vmatpush3.msra.mxu1 %v853_v37  ;;  %v739_v63 = vpop.xlane.xlu1 %738  ;;  %v2936_v37 = vld [vmem:[%s4380_s8] ss:$0 sm:$0xff] }
 0x5ca   :  { %v3516_v50 = vpop.eup %3515  ;;  %3266 = vmatprep.subr.mxu1 %v942_v38  ;;  %3521 = vrcp.f32 %v739_v63 }
 0x5cb   :  { %v759_v51 = vmul.f32 %v3516_v50, %v3924_v8  ;;  %v1146_v8 = vld [vmem:[%s4379_s7 + $0x10] sm:$0xff] }
 0x5cc   :  { %3282 = vmatprep.subr.mxu0 %v1146_v8 }
 0x5cd   :  { %3263 = vmatprep.mubr.msk.f32.mxu1 %vm676_vm4, %v759_v51  ;;  %3283 = vmatpush3.msra.mxu0 %v1146_v8 }
 0x5ce   :  { %v3518_v52 = vpop.eup %3517  ;;  %3284 = vmatprep.subr.mxu0 %v1145_v10 }
 0x5cf   :  { %v748_v53 = vpop.xlane.xlu0 %747  ;;  %v760_v54 = vmul.f32 %v3518_v52, %v3502_v13  ;;  %3285 = vmatpush3.msra.mxu0 %v1145_v10 }
 0x5d0   :  { %3523 = vrcp.f32 %v748_v53  ;;  %3286 = vmatprep.subr.mxu0 %v1144_v11  ;;  %v1287_v53 = vld [vmem:[%s4383_s11 + $0x18] sm:$0xff] }
 0x5d1   :  { %v745_v55 = vpop.xlane.xlu1 %744  ;;  %3264 = vmatmul.mubr.msk.f32.vlgmr.msra.gmra.mxu1 %vm676_vm4, %v760_v54  ;;  %3287 = vmatpush3.msra.mxu0 %v1144_v11  ;;  %v1286_v54 = vld [vmem:[%s4383_s11 + $0x10] sm:$0xff] }
 0x5d2   :  { %3525 = vrcp.f32 %v745_v55  ;;  %3267 = vmatpush3.msra.mxu1 %v942_v38  ;;  %v1285_v55 = vld [vmem:[%s4383_s11 + $0x8] sm:$0xff] }
 0x5d3   :  { %v1029_v56 = vpop.permute.xlu0 %1028  ;;  %3268 = vmatprep.subr.mxu1 %v940_v39 }
 0x5d4   :  { %3269 = vmatpush3.msra.mxu1 %v940_v39 }
 0x5d5   :  { %3273 = vmatprep.subr.mxu1 %v1029_v56  ;;  %v3520_v57 = vpop.eup %3519  ;;  %v1027_v61 = vpop.permute.xlu1 %1026 }
 0x5d6   :  { %v762_v60 = vmul.f32 %v3520_v57, %v3504_v22  ;;  %v1393_v57 = vld [vmem:[%s4385_s13 + $0x78] sm:$0xff] }
 0x5d7   :  { %v3522_v58 = vpop.eup %3521  ;;  %3302 = vmatprep.subr.mxu0 %v1393_v57 }
 0x5d8   :  { %v761_v59 = vmul.f32 %v3522_v58, %v3506_v27  ;;  %v1392_v58 = vld [vmem:[%s4385_s13 + $0x70] sm:$0xff] }
 0x5da   :  { %3270 = vmatprep.mubr.msk.f32.mxu1 %vm676_vm4, %v761_v59  ;;  %v1391_v59 = vld [vmem:[%s4385_s13 + $0x68] sm:$0xff] }
 0x5db   :  { %3271 = vmatmul.mubr.msk.f32.vlgmr.msra.gmra.mxu1 %vm676_vm4, %v762_v60  ;;  %v1390_v60 = vld [vmem:[%s4385_s13 + $0x60] sm:$0xff] }
 0x5dc   :  { %3274 = vmatpush3.msra.mxu1 %v1029_v56  ;;  %v1284_v56 = vld [vmem:[%s4383_s11] sm:$0xff] }
 0x5dd   :  { %3275 = vmatprep.subr.mxu1 %v1027_v61  ;;  %v3524_v0 = vpop.eup %3523 }
 0x5de   :  { %3276 = vmatpush3.msra.mxu1 %v1027_v61  ;;  %v764_v3 = vmul.f32 %v3524_v0, %v3508_v31  ;;  %v1389_v61 = vld [vmem:[%s4385_s13 + $0x58] sm:$0xff]  ;;  %v1388_v0 = vld [vmem:[%s4385_s13 + $0x50] sm:$0xff] }
 0x5df   :  { %v3526_v1 = vpop.eup %3525  ;;  %3291 = vmatprep.subr.mxu1 %v1287_v53 }
 0x5e0   :  { %v763_v2 = vmul.f32 %v3526_v1, %v3510_v35  ;;  %v1387_v1 = vld [vmem:[%s4385_s13 + $0x48] sm:$0xff] }
 0x5e2   :  { %3277 = vmatprep.mubr.msk.f32.mxu1 %vm676_vm4, %v763_v2  ;;  %v1386_v2 = vld [vmem:[%s4385_s13 + $0x40] sm:$0xff] }
 0x5e3   :  { %3278 = vmatmul.mubr.msk.f32.vlgmr.msra.gmra.mxu1 %vm676_vm4, %v764_v3  ;;  %v1385_v3 = vld [vmem:[%s4385_s13 + $0x38] sm:$0xff] }
 0x5e4   :  { %3292 = vmatpush3.msra.mxu1 %v1287_v53 }
 0x5e5   :  { %3293 = vmatprep.subr.mxu1 %v1286_v54 }
 0x5e6   :  { %3294 = vmatpush3.msra.mxu1 %v1286_v54 }
 0x5e7   :  { %3295 = vmatprep.subr.mxu1 %v1285_v55 }
 0x5e8   :  { %3296 = vmatpush3.msra.mxu1 %v1285_v55 }
 0x5e9   :  { %3297 = vmatprep.subr.mxu1 %v1284_v56 }
 0x5ea   :  { %3298 = vmatpush3.msra.mxu1 %v1284_v56 }
 0x686   :  { %v3258_v4 = vpop.f32.mrf.mxu1 }
 0x688   :  { %v843_v5 = vpop.f32.mrf.mxu1 }
 0x691   :  { %v3265_v6 = vpop.f32.mrf.mxu1 }
 0x692   :  { %1117 = vrot.lane.b32.xlu1 %v3265_v6, %s4398_s28  ;;  %v1382_v6 = vld [vmem:[%s4385_s13 + $0x20] sm:$0xff] }
 0x693   :  { %v930_v9 = vpop.f32.mrf.mxu1 }
 0x694   :  { %1115 = vrot.lane.b32.xlu0 %v930_v9, %s4398_s28 }
 0x69b   :  { %v3272_v12 = vpop.f32.mrf.mxu1 }
 0x69c   :  { %1125 = vrot.lane.b32.xlu1 %v3272_v12, %s4396_s26 }
 0x69d   :  { %v1017_v13 = vpop.f32.mrf.mxu1 }
 0x69e   :  { %1123 = vrot.lane.b32.xlu0 %v1017_v13, %s4396_s26  ;;  %s4410_s26 = smov 24  }
 0x6a3   :  { %v3279_v15 = vpop.f32.mrf.mxu1 }
 0x6a4   :  { %1133 = vrot.lane.b32.xlu1 %v3279_v15, %s4394_s27  ;;  %v2937_v15 = vld [vmem:[%s4381_s9] ss:$0 sm:$0xff] }
 0x6a5   :  { %v1104_v17 = vpop.f32.mrf.mxu1 }
 0x6a6   :  { %1131 = vrot.lane.b32.xlu0 %v1104_v17, %s4394_s27 }
 0x704   :  { %v1118_v18 = vpop.permute.xlu1 %1117 }
 0x705   :  { %v1138_v26 = vsel %vm311_vm3, %v3258_v4, %v1118_v18  ;;  %v1384_v4 = vld [vmem:[%s4385_s13 + $0x30] sm:$0xff]  ;;  %v2938_v18 = vld [vmem:[%s4382_s10] ss:$0 sm:$0xff] }
 0x706   :  { %v1116_v19 = vpop.permute.xlu0 %1115 }
 0x707   :  { %v1137_v22 = vsel %vm311_vm3, %v843_v5, %v1116_v19  ;;  %v1383_v5 = vld [vmem:[%s4385_s13 + $0x28] sm:$0xff] }
 0x70e   :  { %v1126_v20 = vpop.permute.xlu1 %1125 }
 0x70f   :  { %v1140_v31 = vsel %vm676_vm4, %v1138_v26, %v1126_v20 }
 0x710   :  { %v1124_v21 = vpop.permute.xlu0 %1123 }
 0x711   :  { %v1139_v27 = vsel %vm676_vm4, %v1137_v22, %v1124_v21 }
 0x716   :  { %v1134_v25 = vpop.permute.xlu1 %1133 }
 0x717   :  { %v1143_v35 = vsel %vm1141_vm5, %v1140_v31, %v1134_v25  ;;  %v1379_v31 = vld [vmem:[%s4385_s13 + $0x8] sm:$0xff] }
 0x718   :  { %v1132_v30 = vpop.permute.xlu0 %1131 }
 0x719   :  { %v1142_v33 = vsel %vm1141_vm5, %v1139_v27, %v1132_v30  ;;  %v1381_v27 = vld [vmem:[%s4385_s13 + $0x18] sm:$0xff]  ;;  %v1380_v30 = vld [vmem:[%s4385_s13 + $0x10] sm:$0xff] }
 0x71a   :  { %3288 = vmatprep.mubr.msk.f32.mxu0 %vm176_vm2, %v1142_v33  ;;  %v1378_v33 = vld [vmem:[%s4385_s13] sm:$0xff] }
 0x71b   :  { %3289 = vmatmul.mubr.msk.f32.vlgmr.msra.gmra.mxu0 %vm176_vm2, %v1143_v35  ;;  %v2939_v35 = vld [vmem:[%s4384_s12] ss:$0 sm:$0xff] }
 0x71c   :  { %3303 = vmatpush3.msra.mxu0 %v1393_v57 }
 0x71d   :  { %3304 = vmatprep.subr.mxu0 %v1392_v58 }
 0x71e   :  { %3305 = vmatpush3.msra.mxu0 %v1392_v58 }
 0x71f   :  { %3306 = vmatprep.subr.mxu0 %v1391_v59 }
 0x720   :  { %3307 = vmatpush3.msra.mxu0 %v1391_v59  ;;  %v2950_v59 = vld [vmem:[%s4378_s6 + $0x38] sm:$0xff] }
 0x721   :  { %3308 = vmatprep.subr.mxu0 %v1390_v60  ;;  %3337 = vmatprep.subr.mxu1 %v2950_v59 }
 0x722   :  { %3309 = vmatpush3.msra.mxu0 %v1390_v60  ;;  %v2949_v60 = vld [vmem:[%s4378_s6 + $0x30] sm:$0xff] }
 0x723   :  { %3310 = vmatprep.subr.mxu0 %v1389_v61 }
 0x724   :  { %3311 = vmatpush3.msra.mxu0 %v1389_v61  ;;  %v2948_v61 = vld [vmem:[%s4378_s6 + $0x28] sm:$0xff] }
 0x725   :  { %3312 = vmatprep.subr.mxu0 %v1388_v0 }
 0x726   :  { %3313 = vmatpush3.msra.mxu0 %v1388_v0  ;;  %v2947_v0 = vld [vmem:[%s4378_s6 + $0x20] sm:$0xff] }
 0x727   :  { %3314 = vmatprep.subr.mxu0 %v1387_v1 }
 0x728   :  { %3315 = vmatpush3.msra.mxu0 %v1387_v1 }
 0x729   :  { %3316 = vmatprep.subr.mxu0 %v1386_v2 }
 0x72a   :  { %3317 = vmatpush3.msra.mxu0 %v1386_v2 }
 0x72b   :  { %3318 = vmatprep.subr.mxu0 %v1385_v3 }
 0x72c   :  { %3319 = vmatpush3.msra.mxu0 %v1385_v3 }
 0x72d   :  { %3320 = vmatprep.subr.mxu0 %v1384_v4 }
 0x72e   :  { %3321 = vmatpush3.msra.mxu0 %v1384_v4 }
 0x72f   :  { %3322 = vmatprep.subr.mxu0 %v1383_v5 }
 0x730   :  { %3323 = vmatpush3.msra.mxu0 %v1383_v5 }
 0x731   :  { %3324 = vmatprep.subr.mxu0 %v1382_v6 }
 0x732   :  { %3325 = vmatpush3.msra.mxu0 %v1382_v6 }
 0x733   :  { %3326 = vmatprep.subr.mxu0 %v1381_v27 }
 0x734   :  { %3327 = vmatpush3.msra.mxu0 %v1381_v27 }
 0x735   :  { %3328 = vmatprep.subr.mxu0 %v1380_v30 }
 0x736   :  { %3329 = vmatpush3.msra.mxu0 %v1380_v30 }
 0x737   :  { %3330 = vmatprep.subr.mxu0 %v1379_v31 }
 0x738   :  { %3331 = vmatpush3.msra.mxu0 %v1379_v31 }
 0x739   :  { %3332 = vmatprep.subr.mxu0 %v1378_v33 }
 0x73a   :  { %3333 = vmatpush3.msra.mxu0 %v1378_v33 }
 0x7db   :  { %v3290_v36 = vpop.f32.mrf.mxu0 }
 0x7dc   :  { %v1230_v38 = vadd.f32 %v3290_v36, %v3763_v29 }
 0x7dd   :  { %v1220_v39 = vpop.f32.mrf.mxu0 }
 0x7de   :  { %v3977_v41 = vadd.f32 %v2936_v37, %v1230_v38  ;;  %v1229_v43 = vadd.f32 %v1220_v39, %v3761_v28 }
 0x7e0   :  { %v3980_v44 = vadd.f32 %v2936_v37, %v1229_v43  ;;  %v1245_v45 = vsel %vm176_vm2, %v3977_v41, 0.0 }
 0x7e1   :  { %1246 = vadd.xlane.f32.xlu1 %v1245_v45 }
 0x7e2   :  { %v1242_v46 = vsel %vm176_vm2, %v3980_v44, 0.0 }
 0x7e3   :  { %1243 = vadd.xlane.f32.xlu0 %v1242_v46 }
 0x86a   :  { %v1247_v47 = vpop.xlane.xlu1 %1246 }
 0x86b   :  { %v1249_v48 = vmul.f32 0.03125, %v1247_v47  ;;  %v2942_v47 = vld [vmem:[%s4386_s14] ss:$0 sm:$0xff] }
 0x86c   :  { %v1244_v49 = vpop.xlane.xlu0 %1243 }
 0x86d   :  { %v1248_v62 = vmul.f32 0.03125, %v1244_v49  ;;  %v3987_v29 = vsub.f32 %v3977_v41, %v1249_v48 }
 0x86f   :  { %v3990_v63 = vsub.f32 %v3980_v44, %v1248_v62  ;;  %v1253_v51 = vmul.f32 %v3987_v29, %v3987_v29 }
 0x871   :  { %v1252_v28 = vmul.f32 %v3990_v63, %v3990_v63  ;;  %v1257_v52 = vsel %vm176_vm2, %v1253_v51, 0.0 }
 0x873   :  { %v1254_v50 = vsel %vm176_vm2, %v1252_v28, 0.0 }
 0x874   :  { %1255 = vadd.xlane.f32.xlu0 %v1254_v50 }
 0x878   :  { %1258 = vadd.xlane.f32.xlu0 %v1257_v52 }
 0x8fd   :  { %v1256_v7 = vpop.xlane.xlu0 %1255 }
 0x8fe   :  { %v1260_v8 = vmul.f32 0.03125, %v1256_v7 }
 0x900   :  { %v1262_v9 = vadd.f32 1e-05, %v1260_v8  ;;  %v2945_v8 = vld [vmem:[%s4376_s4 + $0x1] ss:$0 sm:$0xff]  ;;  %s4406_s4 = smov 48  }
 0x901   :  { %v1259_v10 = vpop.xlane.xlu0 %1258 }
 0x902   :  { %3527 = vrsqrt.f32 %v1262_v9  ;;  %v1261_v11 = vmul.f32 0.03125, %v1259_v10 }
 0x904   :  { %v1263_v12 = vadd.f32 1e-05, %v1261_v11 }
 0x906   :  { %3529 = vrsqrt.f32 %v1263_v12 }
 0x90f   :  { %v3528_v13 = vpop.eup %3527 }
 0x910   :  { %v1266_v17 = vmul.f32 %v3528_v13, %v3990_v63  ;;  %v2946_v13 = vld [vmem:[%s4377_s5 + $0x1] ss:$0 sm:$0xff]  ;;  %s4407_s5 = smov 40  }
 0x912   :  { %v1274_v19 = vmul.f32 %v2937_v15, %v1266_v17 }
 0x913   :  { %v3530_v20 = vpop.eup %3529 }
 0x914   :  { %v1267_v21 = vmul.f32 %v3530_v20, %v3987_v29  ;;  %v1282_v22 = vadd.f32 %v2938_v18, %v1274_v19 }
 0x916   :  { %v1275_v25 = vmul.f32 %v2937_v15, %v1267_v21  ;;  %3299 = vmatprep.mubr.msk.f32.mxu1 %vm176_vm2, %v1282_v22 }
 0x918   :  { %v1283_v26 = vadd.f32 %v2938_v18, %v1275_v25 }
 0x91a   :  { %3300 = vmatmul.mubr.msk.f32.vlgmr.msra.gmra.mxu1 %vm176_vm2, %v1283_v26 }
 0x91b   :  { %3338 = vmatpush3.msra.mxu1 %v2950_v59 }
 0x91c   :  { %3339 = vmatprep.subr.mxu1 %v2949_v60 }
 0x91d   :  { %3340 = vmatpush3.msra.mxu1 %v2949_v60 }
 0x91e   :  { %3341 = vmatprep.subr.mxu1 %v2948_v61 }
 0x91f   :  { %3342 = vmatpush3.msra.mxu1 %v2948_v61 }
 0x920   :  { %3343 = vmatprep.subr.mxu1 %v2947_v0 }
 0x921   :  { %3344 = vmatpush3.msra.mxu1 %v2947_v0 }
 0x9da   :  { %v3301_v36 = vpop.f32.mrf.mxu1 }
 0x9db   :  { %v1373_v37 = vadd.f32 %v3301_v36, %v2939_v35 }
 0x9dc   :  { %v1367_v38 = vpop.f32.mrf.mxu1 }
 0x9dd   :  { %v1368_v39 = vadd.f32 %v2939_v35, %v1367_v38  ;;  %v1377_v45 = vmax.f32 %v1373_v37, 0.0 }
 0x9df   :  { %v1376_v43 = vmax.f32 %v1368_v39, 0.0 }
 0x9e1   :  { %3334 = vmatprep.mubr.f32.mxu0 %v1376_v43 }
 0x9e2   :  { %3335 = vmatmul.mubr.f32.vlgmr.msra.gmra.mxu0 %v1377_v45 }
 0xaa2   :  { %v3336_v46 = vpop.f32.mrf.mxu0 }
 0xaa3   :  { %v1470_v48 = vadd.f32 %v3336_v46, %v3977_v41 }
 0xaa4   :  { %v1460_v49 = vpop.f32.mrf.mxu0 }
 0xaa5   :  { %v4075_v62 = vadd.f32 %v2942_v47, %v1470_v48  ;;  %v1469_v29 = vadd.f32 %v1460_v49, %v3980_v44 }
 0xaa7   :  { %v4078_v63 = vadd.f32 %v2942_v47, %v1469_v29  ;;  %v1487_v28 = vsel %vm176_vm2, %v4075_v62, 0.0 }
 0xaa8   :  { %1488 = vadd.xlane.f32.xlu0 %v1487_v28 }
 0xaa9   :  { %v1484_v50 = vsel %vm176_vm2, %v4078_v63, 0.0 }
 0xaaa   :  { %1485 = vadd.xlane.f32.xlu1 %v1484_v50 }
 0xb31   :  { %v1489_v51 = vpop.xlane.xlu0 %1488 }
 0xb32   :  { %v1491_v52 = vmul.f32 0.03125, %v1489_v51 }
 0xb33   :  { %v1486_v53 = vpop.xlane.xlu1 %1485 }
 0xb34   :  { %v1493_v41 = vsub.f32 %v4075_v62, %v1491_v52  ;;  %v1490_v54 = vmul.f32 0.03125, %v1486_v53 }
 0xb36   :  { %v1492_v55 = vsub.f32 %v4078_v63, %v1490_v54  ;;  %v1495_v56 = vmul.f32 %v1493_v41, %v1493_v41 }
 0xb38   :  { %v1499_v44 = vsel %vm176_vm2, %v1495_v56, 0.0  ;;  %v1494_v57 = vmul.f32 %v1492_v55, %v1492_v55 }
 0xb39   :  { %1500 = vadd.xlane.f32.xlu0 %v1499_v44 }
 0xb3a   :  { %v1496_v58 = vsel %vm176_vm2, %v1494_v57, 0.0 }
 0xb3b   :  { %1497 = vadd.xlane.f32.xlu1 %v1496_v58 }
 0xbc2   :  { %v1501_v1 = vpop.xlane.xlu0 %1500 }
 0xbc3   :  { %v1503_v2 = vmul.f32 0.03125, %v1501_v1 }
 0xbc4   :  { %v1498_v3 = vpop.xlane.xlu1 %1497 }
 0xbc5   :  { %v1505_v4 = vadd.f32 1e-05, %v1503_v2  ;;  %v1502_v5 = vmul.f32 0.03125, %v1498_v3 }
 0xbc7   :  { %3531 = vrsqrt.f32 %v1505_v4  ;;  %v1504_v6 = vadd.f32 1e-05, %v1502_v5 }
 0xbc9   :  { %3533 = vrsqrt.f32 %v1504_v6 }
 0xbd4   :  { %v3532_v7 = vpop.eup %3531 }
 0xbd5   :  { %v1509_v9 = vmul.f32 %v3532_v7, %v1493_v41 }
 0xbd6   :  { %v3534_v10 = vpop.eup %3533 }
 0xbd7   :  { %v1508_v11 = vmul.f32 %v3534_v10, %v1492_v55  ;;  %v1517_v12 = vmul.f32 %v2945_v8, %v1509_v9 }
 0xbd9   :  { %v1516_v15 = vmul.f32 %v2945_v8, %v1508_v11  ;;  %v1525_v18 = vadd.f32 %v2946_v13, %v1517_v12 }
 0xbdb   :  { %v1524_v17 = vadd.f32 %v2946_v13, %v1516_v15 }
 0xbdd   :  { %3345 = vmatprep.mubr.msk.f32.mxu1 %vm176_vm2, %v1524_v17 }
 0xbde   :  { %3346 = vmatmul.mubr.msk.f32.vlgmr.msra.gmra.mxu1 %vm176_vm2, %v1525_v18 }
 0xc9e   :  { %v4108_v19 = vpop.f32.mrf.mxu1 }
 0xc9f   :  { %1616 = vrot.lane.b32.xlu1 %v4108_v19, %s3595_s18 }
 0xca0   :  { %v4112_v20 = vpop.f32.mrf.mxu1 }
 0xca1   :  { %1614 = vrot.lane.b32.xlu0 %v4112_v20, %s3595_s18  ;;  %3352 = vmatprep.mubr.msk.f32.mxu1 %vm311_vm3, %v4112_v20  ;;  %s3609_s18 = smov [#allocation2]  }
 0xca3   :  { %1707 = vrot.lane.b32.xlu1 %v4108_v19, %s3597_s1 }
 0xca5   :  { %1703 = vrot.lane.b32.xlu0 %v4108_v19, %s3596_s19 }
 0xca7   :  { %1798 = vrot.lane.b32.xlu1 %v4108_v19, %s3600_s21 }
 0xca9   :  { %1701 = vrot.lane.b32.xlu0 %v4112_v20, %s3596_s19  ;;  %s2891_s19 = sshll.u32 %s3609_s18, 4  ;;  %s2892_s19 = int_to_ptr.vmem [resolvable:$true] %s2891_s19 }
 0xcaa   :  { %p3576_p1 = scmp.lt.s32.totalorder %s2892_s19, %s2892_s19 }
 0xcab   :  { %1705 = vrot.lane.b32.xlu1 %v4112_v20, %s3597_s1 }
 0xcad   :  { %1796 = vrot.lane.b32.xlu0 %v4112_v20, %s3600_s21 }
 0xcaf   :  { %1889 = vrot.lane.b32.xlu1 %v4108_v19, %s3601_s22 }
 0xcb1   :  { %1792 = vrot.lane.b32.xlu0 %v4112_v20, %s3598_s3 }
 0xcb3   :  { %1794 = vrot.lane.b32.xlu1 %v4108_v19, %s3598_s3 }
 0xcb5   :  { %1883 = vrot.lane.b32.xlu0 %v4112_v20, %s3599_s20 }
 0xcb7   :  { %1887 = vrot.lane.b32.xlu1 %v4112_v20, %s3601_s22 }
 0xcbb   :  { %1885 = vrot.lane.b32.xlu1 %v4108_v19, %s3599_s20 }
 0xd11   :  { %v1617_v21 = vpop.permute.xlu1 %1616 }
 0xd12   :  { %3348 = vmatprep.subr.msk.mxu1 %vm311_vm3, %v1617_v21 }
 0xd13   :  { %3349 = vmatpush3.xpose.msk.msra.mxu1 %vm311_vm3, %v1617_v21  ;;  %v1615_v22 = vpop.permute.xlu0 %1614 }
 0xd14   :  { %3350 = vmatprep.subr.msk.mxu1 %vm311_vm3, %v1615_v22 }
 0xd15   :  { %v1708_v25 = vpop.permute.xlu1 %1707 }
 0xd17   :  { %3351 = vmatpush3.xpose.msk.msra.mxu1 %vm311_vm3, %v1615_v22  ;;  %v1704_v26 = vpop.permute.xlu0 %1703 }
 0xd18   :  { %3355 = vmatprep.subr.msk.mxu1 %vm311_vm3, %v1708_v25 }
 0xd19   :  { %v1799_v27 = vpop.permute.xlu1 %1798 }
 0xd1a   :  { %3353 = vmatmul.mubr.msk.f32.vlgmr.msra.gmra.mxu1 %vm311_vm3, %v4108_v19 }
 0xd1b   :  { %v1702_v30 = vpop.permute.xlu0 %1701  ;;  %3356 = vmatpush3.xpose.msk.msra.mxu1 %vm311_vm3, %v1708_v25 }
 0xd1c   :  { %3359 = vmatprep.mubr.msk.f32.mxu1 %vm311_vm3, %v1702_v30 }
 0xd1d   :  { %v1706_v31 = vpop.permute.xlu1 %1705 }
 0xd1e   :  { %3357 = vmatprep.subr.msk.mxu1 %vm311_vm3, %v1706_v31 }
 0xd1f   :  { %v1797_v33 = vpop.permute.xlu0 %1796  ;;  %3358 = vmatpush3.xpose.msk.msra.mxu1 %vm311_vm3, %v1706_v31 }
 0xd20   :  { %3362 = vmatprep.subr.msk.mxu1 %vm311_vm3, %v1799_v27 }
 0xd21   :  { %v1890_v35 = vpop.permute.xlu1 %1889 }
 0xd22   :  { %3360 = vmatmul.mubr.msk.f32.vlgmr.msra.gmra.mxu1 %vm311_vm3, %v1704_v26  ;;  %3369 = vmatprep.subr.msk.mxu0 %vm311_vm3, %v1890_v35 }
 0xd23   :  { %3370 = vmatpush3.xpose.msk.msra.mxu0 %vm311_vm3, %v1890_v35  ;;  %v1793_v36 = vpop.permute.xlu0 %1792  ;;  %3363 = vmatpush3.xpose.msk.msra.mxu1 %vm311_vm3, %v1799_v27 }
 0xd24   :  { %3364 = vmatprep.subr.msk.mxu1 %vm311_vm3, %v1797_v33  ;;  %3366 = vmatprep.mubr.msk.f32.mxu1 %vm311_vm3, %v1793_v36 }
 0xd25   :  { %v1795_v37 = vpop.permute.xlu1 %1794 }
 0xd27   :  { %v1884_v38 = vpop.permute.xlu0 %1883  ;;  %3365 = vmatpush3.xpose.msk.msra.mxu1 %vm311_vm3, %v1797_v33 }
 0xd28   :  { %3373 = vmatprep.mubr.msk.f32.mxu0 %vm311_vm3, %v1884_v38 }
 0xd29   :  { %v1888_v39 = vpop.permute.xlu1 %1887 }
 0xd2a   :  { %3367 = vmatmul.mubr.msk.f32.vlgmr.msra.gmra.mxu1 %vm311_vm3, %v1795_v37  ;;  %3371 = vmatprep.subr.msk.mxu0 %vm311_vm3, %v1888_v39 }
 0xd2b   :  { %3372 = vmatpush3.xpose.msk.msra.mxu0 %vm311_vm3, %v1888_v39 }
 0xd2d   :  { %v1886_v43 = vpop.permute.xlu1 %1885 }
 0xd2e   :  { %3374 = vmatmul.mubr.msk.f32.vlgmr.msra.gmra.mxu0 %vm311_vm3, %v1886_v43 }
 0xdda   :  { %v3354_v45 = vpop.f32.mrf.mxu1 }
 0xddb   :  { %v1975_v46 = vadd.f32 %v3354_v45, %v3854_v14 }
 0xddc   :  { %v1692_v47 = vpop.f32.mrf.mxu1 }
 0xddd   :  { %v1974_v48 = vadd.f32 %v1692_v47, %v3859_v16  ;;  %v1985_v49 = vsel %vm676_vm4, %v1975_v46, -inf }
 0xdde   :  { %1986 = vmax.xlane.f32.xlu1 %v1985_v49 }
 0xddf   :  { %v1982_v29 = vsel %vm676_vm4, %v1974_v48, -inf }
 0xde0   :  { %1983 = vmax.xlane.f32.xlu0 %v1982_v29 }
 0xde2   :  { %v3361_v28 = vpop.f32.mrf.mxu1 }
 0xde3   :  { %v1977_v50 = vadd.f32 %v3361_v28, %v3873_v24 }
 0xde4   :  { %v1783_v51 = vpop.f32.mrf.mxu1 }
 0xde5   :  { %v1976_v52 = vadd.f32 %v1783_v51, %v3868_v23  ;;  %v1991_v53 = vsel %vm676_vm4, %v1977_v50, -inf }
 0xde6   :  { %1992 = vmax.xlane.f32.xlu0 %v1991_v53 }
 0xde7   :  { %v1988_v14 = vsel %vm676_vm4, %v1976_v52, -inf }
 0xdea   :  { %1989 = vmax.xlane.f32.xlu0 %v1988_v14  ;;  %v3368_v41 = vpop.f32.mrf.mxu1 }
 0xdeb   :  { %v1979_v16 = vadd.f32 %v3368_v41, %v3882_v32 }
 0xdec   :  { %v1874_v54 = vpop.f32.mrf.mxu1 }
 0xded   :  { %v1978_v55 = vadd.f32 %v1874_v54, %v3887_v34  ;;  %v1997_v56 = vsel %vm676_vm4, %v1979_v16, -inf }
 0xdee   :  { %v3375_v44 = vpop.f32.mrf.mxu0  ;;  %1998 = vmax.xlane.f32.xlu0 %v1997_v56 }
 0xdef   :  { %v1981_v24 = vadd.f32 %v3375_v44, %v3896_v40  ;;  %v1994_v23 = vsel %vm676_vm4, %v1978_v55, -inf }
 0xdf0   :  { %v1965_v57 = vpop.f32.mrf.mxu0  ;;  %1995 = vmax.xlane.f32.xlu1 %v1994_v23 }
 0xdf1   :  { %v1980_v58 = vadd.f32 %v1965_v57, %v3901_v42  ;;  %v2003_v59 = vsel %vm676_vm4, %v1981_v24, -inf }
 0xdf2   :  { %2004 = vmax.xlane.f32.xlu0 %v2003_v59 }
 0xdf3   :  { %v2000_v32 = vsel %vm676_vm4, %v1980_v58, -inf }
 0xdf4   :  { %2001 = vmax.xlane.f32.xlu1 %v2000_v32 }
 0xe05   :  { %2072 = vrot.lane.b32.xlu1 %v4108_v19, %s3602_s0 }
 0xe08   :  { %2070 = vrot.lane.b32.xlu0 %v4112_v20, %s3602_s0 }
 0xe09   :  { %2159 = vrot.lane.b32.xlu1 %v4108_v19, %s3603_s2 }
 0xe0c   :  { %2246 = vrot.lane.b32.xlu0 %v4108_v19, %s4406_s4 }
 0xe0d   :  { %2157 = vrot.lane.b32.xlu1 %v4112_v20, %s3603_s2  ;;  %s4408_s2 = smov 8  }
 0xe11   :  { %2333 = vrot.lane.b32.xlu1 %v4108_v19, %s4407_s5 }
 0xe67   :  { %v1987_v34 = vpop.xlane.xlu1 %1986 }
 0xe68   :  { %v2007_v40 = vsub.f32 %v1975_v46, %v1987_v34 }
 0xe69   :  { %v1984_v42 = vpop.xlane.xlu0 %1983 }
 0xe6a   :  { %v2016_v60 = vmul.f32 1.442695, %v2007_v40  ;;  %v2006_v61 = vsub.f32 %v1974_v48, %v1984_v42 }
 0xe6c   :  { %3535 = vpow2.f32 %v2016_v60  ;;  %v2014_v0 = vmul.f32 1.442695, %v2006_v61 }
 0xe6e   :  { %3537 = vpow2.f32 %v2014_v0 }
 0xe6f   :  { %v1993_v1 = vpop.xlane.xlu0 %1992 }
 0xe70   :  { %v2009_v5 = vsub.f32 %v1977_v50, %v1993_v1 }
 0xe72   :  { %v2020_v13 = vmul.f32 1.442695, %v2009_v5  ;;  %v2980_v5 = vld [vmem:[%s4379_s7 + $0x38] sm:$0xff] }
 0xe73   :  { %v1990_v2 = vpop.xlane.xlu0 %1989 }
 0xe74   :  { %v2008_v10 = vsub.f32 %v1976_v52, %v1990_v2 }
 0xe76   :  { %v2018_v22 = vmul.f32 1.442695, %v2008_v10  ;;  %v2977_v10 = vld [vmem:[%s4379_s7 + $0x20] sm:$0xff] }
 0xe77   :  { %v1999_v3 = vpop.xlane.xlu0 %1998 }
 0xe78   :  { %v2011_v17 = vsub.f32 %v1979_v16, %v1999_v3 }
 0xe79   :  { %v4194_v4 = vpop.eup %3535  ;;  %v1996_v6 = vpop.xlane.xlu1 %1995 }
 0xe7a   :  { %v2033_v7 = vsel %vm676_vm4, %v4194_v4, 0.0  ;;  %v2010_v25 = vsub.f32 %v1978_v55, %v1996_v6  ;;  %v2024_v30 = vmul.f32 1.442695, %v2011_v17 }
 0xe7b   :  { %v3538_v8 = vpop.eup %3537  ;;  %2034 = vadd.xlane.f32.xlu0 %v2033_v7  ;;  %v2005_v9 = vpop.xlane.xlu0 %2004  ;;  %v2979_v7 = vld [vmem:[%s4379_s7 + $0x30] sm:$0xff] }
 0xe7c   :  { %v2013_v11 = vsub.f32 %v1981_v24, %v2005_v9  ;;  %v2030_v12 = vsel %vm676_vm4, %v3538_v8, 0.0  ;;  %v2022_v33 = vmul.f32 1.442695, %v2010_v25 }
 0xe7d   :  { %2031 = vadd.xlane.f32.xlu1 %v2030_v12  ;;  %v2002_v15 = vpop.xlane.xlu1 %2001 }
 0xe7e   :  { %v2028_v18 = vmul.f32 1.442695, %v2013_v11  ;;  %v2012_v19 = vsub.f32 %v1980_v58, %v2002_v15 }
 0xe7f   :  { %v2071_v21 = vpop.permute.xlu0 %2070 }
 0xe80   :  { %3539 = vpow2.f32 %v2028_v18  ;;  %v2026_v26 = vmul.f32 1.442695, %v2012_v19 }
 0xe81   :  { %3541 = vpow2.f32 %v2020_v13  ;;  %v2073_v27 = vpop.permute.xlu1 %2072 }
 0xe82   :  { %3543 = vpow2.f32 %v2026_v26  ;;  %3376 = vmatprep.subr.mxu1 %v2073_v27 }
 0xe83   :  { %v2247_v31 = vpop.permute.xlu0 %2246  ;;  %3377 = vmatpush3.msra.mxu1 %v2073_v27  ;;  %3545 = vpow2.f32 %v2018_v22 }
 0xe84   :  { %3378 = vmatprep.subr.mxu1 %v2071_v21  ;;  %3390 = vmatprep.subr.mxu0 %v2247_v31  ;;  %3547 = vpow2.f32 %v2024_v30 }
 0xe85   :  { %3379 = vmatpush3.msra.mxu1 %v2071_v21  ;;  %3391 = vmatpush3.msra.mxu0 %v2247_v31  ;;  %v2160_v35 = vpop.permute.xlu1 %2159  ;;  %3549 = vpow2.f32 %v2022_v33 }
 0xe86   :  { %3383 = vmatprep.subr.mxu1 %v2160_v35 }
 0xe89   :  { %v2158_v50 = vpop.permute.xlu1 %2157 }
 0xe8d   :  { %v4199_v36 = vpop.eup %3539  ;;  %v2334_v51 = vpop.permute.xlu1 %2333 }
 0xe8e   :  { %v3542_v37 = vpop.eup %3541  ;;  %v2051_v38 = vsel %vm676_vm4, %v4199_v36, 0.0 }
 0xe8f   :  { %v3544_v39 = vpop.eup %3543  ;;  %2052 = vadd.xlane.f32.xlu0 %v2051_v38  ;;  %v2039_v46 = vsel %vm676_vm4, %v3542_v37, 0.0 }
 0xe90   :  { %v2048_v43 = vsel %vm676_vm4, %v3544_v39, 0.0  ;;  %v3546_v45 = vpop.eup %3545 }
 0xe91   :  { %2049 = vadd.xlane.f32.xlu1 %v2048_v43  ;;  %v3548_v47 = vpop.eup %3547  ;;  %v2036_v48 = vsel %vm676_vm4, %v3546_v45, 0.0 }
 0xe92   :  { %v3550_v49 = vpop.eup %3549  ;;  %v2045_v29 = vsel %vm676_vm4, %v3548_v47, 0.0 }
 0xe93   :  { %2040 = vadd.xlane.f32.xlu0 %v2039_v46  ;;  %v2042_v28 = vsel %vm676_vm4, %v3550_v49, 0.0 }
 0xe95   :  { %2037 = vadd.xlane.f32.xlu1 %v2036_v48 }
 0xe97   :  { %2046 = vadd.xlane.f32.xlu0 %v2045_v29 }
 0xe99   :  { %2043 = vadd.xlane.f32.xlu1 %v2042_v28 }
 0xeaa   :  { %2331 = vrot.lane.b32.xlu1 %v4112_v20, %s4407_s5 }
 0xead   :  { %2244 = vrot.lane.b32.xlu0 %v4112_v20, %s4406_s4 }
 0xf04   :  { %v2035_v52 = vpop.xlane.xlu0 %2034 }
 0xf05   :  { %3551 = vrcp.f32 %v2035_v52 }
 0xf06   :  { %v2032_v53 = vpop.xlane.xlu1 %2031 }
 0xf07   :  { %3553 = vrcp.f32 %v2032_v53 }
 0xf12   :  { %v3552_v14 = vpop.eup %3551 }
 0xf13   :  { %v2063_v54 = vmul.f32 %v3552_v14, %v4194_v4 }
 0xf14   :  { %v3554_v41 = vpop.eup %3553 }
 0xf15   :  { %v2062_v16 = vmul.f32 %v3554_v41, %v3538_v8  ;;  %v2978_v8 = vld [vmem:[%s4379_s7 + $0x28] sm:$0xff] }
 0xf17   :  { %3380 = vmatprep.mubr.msk.f32.mxu1 %vm676_vm4, %v2062_v16 }
 0xf18   :  { %v2053_v55 = vpop.xlane.xlu0 %2052  ;;  %3381 = vmatmul.mubr.msk.f32.vlgmr.msra.gmra.mxu1 %vm676_vm4, %v2063_v54  ;;  %v2992_v54 = vld [vmem:[%s4383_s11 + $0x38] sm:$0xff] }
 0xf19   :  { %3384 = vmatpush3.msra.mxu1 %v2160_v35 }
 0xf1a   :  { %3385 = vmatprep.subr.mxu1 %v2158_v50  ;;  %v2050_v56 = vpop.xlane.xlu1 %2049 }
 0xf1b   :  { %3386 = vmatpush3.msra.mxu1 %v2158_v50  ;;  %3555 = vrcp.f32 %v2050_v56  ;;  %v2990_v56 = vld [vmem:[%s4383_s11 + $0x28] sm:$0xff] }
 0xf1c   :  { %3397 = vmatprep.subr.mxu1 %v2334_v51  ;;  %v2041_v20 = vpop.xlane.xlu0 %2040 }
 0xf1d   :  { %3557 = vrcp.f32 %v2041_v20  ;;  %v2989_v20 = vld [vmem:[%s4383_s11 + $0x20] sm:$0xff] }
 0xf1e   :  { %v2038_v44 = vpop.xlane.xlu1 %2037 }
 0xf1f   :  { %3559 = vrcp.f32 %v2038_v44  ;;  %v3012_v44 = vld [vmem:[%s4385_s13 + $0xf8] sm:$0xff] }
 0xf20   :  { %v2047_v24 = vpop.xlane.xlu0 %2046  ;;  %3561 = vrcp.f32 %v2053_v55  ;;  %v2991_v55 = vld [vmem:[%s4383_s11 + $0x30] sm:$0xff] }
 0xf21   :  { %3563 = vrcp.f32 %v2047_v24  ;;  %v3011_v24 = vld [vmem:[%s4385_s13 + $0xf0] sm:$0xff] }
 0xf22   :  { %v2044_v23 = vpop.xlane.xlu1 %2043 }
 0xf23   :  { %3565 = vrcp.f32 %v2044_v23  ;;  %v3010_v23 = vld [vmem:[%s4385_s13 + $0xe8] sm:$0xff] }
 0xf24   :  { %v2245_v57 = vpop.permute.xlu0 %2244 }
 0xf25   :  { %3392 = vmatprep.subr.mxu0 %v2245_v57 }
 0xf26   :  { %3393 = vmatpush3.msra.mxu0 %v2245_v57  ;;  %v2332_v1 = vpop.permute.xlu1 %2331  ;;  %v3009_v57 = vld [vmem:[%s4385_s13 + $0xe0] sm:$0xff] }
 0xf27   :  { %3404 = vmatprep.subr.mxu0 %v2980_v5 }
 0xf28   :  { %v3556_v58 = vpop.eup %3555 }
 0xf29   :  { %v2068_v61 = vmul.f32 %v3556_v58, %v3544_v39  ;;  %v2984_v39 = vld [vmem:[%s4380_s8 + $0x1] ss:$0 sm:$0xff]  ;;  %v3008_v58 = vld [vmem:[%s4385_s13 + $0xd8] sm:$0xff] }
 0xf2a   :  { %v3558_v59 = vpop.eup %3557 }
 0xf2b   :  { %v2065_v42 = vmul.f32 %v3558_v59, %v3542_v37  ;;  %v3007_v59 = vld [vmem:[%s4385_s13 + $0xd0] sm:$0xff] }
 0xf2c   :  { %v3560_v32 = vpop.eup %3559 }
 0xf2d   :  { %v2064_v34 = vmul.f32 %v3560_v32, %v3546_v45  ;;  %v3562_v40 = vpop.eup %3561  ;;  %v3006_v32 = vld [vmem:[%s4385_s13 + $0xc8] sm:$0xff] }
 0xf2e   :  { %v3564_v60 = vpop.eup %3563  ;;  %v2069_v4 = vmul.f32 %v3562_v40, %v4199_v36  ;;  %v3004_v40 = vld [vmem:[%s4385_s13 + $0xb8] sm:$0xff] }
 0xf2f   :  { %3387 = vmatprep.mubr.msk.f32.mxu1 %vm676_vm4, %v2064_v34  ;;  %v2067_v3 = vmul.f32 %v3564_v60, %v3548_v47  ;;  %v3005_v34 = vld [vmem:[%s4385_s13 + $0xc0] sm:$0xff]  ;;  %v3002_v60 = vld [vmem:[%s4385_s13 + $0xa8] sm:$0xff] }
 0xf30   :  { %v3566_v0 = vpop.eup %3565  ;;  %3388 = vmatmul.mubr.msk.f32.vlgmr.msra.gmra.mxu1 %vm676_vm4, %v2065_v42  ;;  %v3003_v42 = vld [vmem:[%s4385_s13 + $0xb0] sm:$0xff] }
 0xf31   :  { %3398 = vmatpush3.msra.mxu1 %v2334_v51  ;;  %3401 = vmatprep.mubr.msk.f32.mxu1 %vm676_vm4, %v2068_v61  ;;  %v2066_v2 = vmul.f32 %v3566_v0, %v3550_v49  ;;  %v3001_v61 = vld [vmem:[%s4385_s13 + $0xa0] sm:$0xff] }
 0xf32   :  { %3399 = vmatprep.subr.mxu1 %v2332_v1 }
 0xf33   :  { %3400 = vmatpush3.msra.mxu1 %v2332_v1  ;;  %3394 = vmatprep.mubr.msk.f32.mxu0 %vm676_vm4, %v2066_v2 }
 0xf34   :  { %3395 = vmatmul.mubr.msk.f32.vlgmr.msra.gmra.mxu0 %vm676_vm4, %v2067_v3  ;;  %3402 = vmatmul.mubr.msk.f32.vlgmr.msra.gmra.mxu1 %vm676_vm4, %v2069_v4 }
 0xf35   :  { %3405 = vmatpush3.msra.mxu0 %v2980_v5  ;;  %3415 = vmatprep.subr.mxu1 %v2992_v54 }
 0xf36   :  { %3406 = vmatprep.subr.mxu0 %v2979_v7  ;;  %3416 = vmatpush3.msra.mxu1 %v2992_v54 }
 0xf37   :  { %3407 = vmatpush3.msra.mxu0 %v2979_v7  ;;  %3417 = vmatprep.subr.mxu1 %v2991_v55  ;;  %v2987_v7 = vld [vmem:[%s4381_s9 + $0x1] ss:$0 sm:$0xff] }
 0xf38   :  { %3408 = vmatprep.subr.mxu0 %v2978_v8  ;;  %3418 = vmatpush3.msra.mxu1 %v2991_v55 }
 0xf39   :  { %3409 = vmatpush3.msra.mxu0 %v2978_v8  ;;  %3419 = vmatprep.subr.mxu1 %v2990_v56 }
 0xf3a   :  { %3410 = vmatprep.subr.mxu0 %v2977_v10  ;;  %3420 = vmatpush3.msra.mxu1 %v2990_v56 }
 0xf3b   :  { %3411 = vmatpush3.msra.mxu0 %v2977_v10  ;;  %3421 = vmatprep.subr.mxu1 %v2989_v20 }
 0xf3c   :  { %3422 = vmatpush3.msra.mxu1 %v2989_v20  ;;  %3426 = vmatprep.subr.mxu0 %v3012_v44 }
 0xfd8   :  { %v3382_v6 = vpop.f32.mrf.mxu1 }
 0xfda   :  { %v2148_v9 = vpop.f32.mrf.mxu1 }
 0xff0   :  { %v3389_v11 = vpop.f32.mrf.mxu1 }
 0xff1   :  { %2422 = vrot.lane.b32.xlu1 %v3389_v11, %s4408_s2 }
 0xff2   :  { %v2235_v12 = vpop.f32.mrf.mxu1 }
 0xff3   :  { %2420 = vrot.lane.b32.xlu0 %v2235_v12, %s4408_s2 }
 0xff4   :  { %v3396_v13 = vpop.f32.mrf.mxu0  ;;  %v3403_v15 = vpop.f32.mrf.mxu1 }
 0xff5   :  { %2430 = vrot.lane.b32.xlu1 %v3396_v13, %s4409_s29 }
 0xff6   :  { %v2322_v17 = vpop.f32.mrf.mxu0  ;;  %v2409_v18 = vpop.f32.mrf.mxu1 }
 0xff7   :  { %2428 = vrot.lane.b32.xlu0 %v2322_v17, %s4409_s29 }
 0xff9   :  { %2438 = vrot.lane.b32.xlu1 %v3403_v15, %s4410_s26 }
 0xffb   :  { %2436 = vrot.lane.b32.xlu0 %v2409_v18, %s4410_s26  ;;  %v3000_v18 = vld [vmem:[%s4385_s13 + $0x98] sm:$0xff] }
0x1063   :  { %v2423_v19 = vpop.permute.xlu1 %2422 }
0x1064   :  { %v2443_v30 = vsel %vm311_vm3, %v3382_v6, %v2423_v19  ;;  %v2999_v19 = vld [vmem:[%s4385_s13 + $0x90] sm:$0xff] }
0x1065   :  { %v2421_v21 = vpop.permute.xlu0 %2420 }
0x1066   :  { %v2442_v26 = vsel %vm311_vm3, %v2148_v9, %v2421_v21  ;;  %v2988_v9 = vld [vmem:[%s4382_s10 + $0x1] ss:$0 sm:$0xff]  ;;  %v2998_v21 = vld [vmem:[%s4385_s13 + $0x88] sm:$0xff] }
0x1067   :  { %v2431_v22 = vpop.permute.xlu1 %2430 }
0x1068   :  { %v2445_v35 = vsel %vm676_vm4, %v2443_v30, %v2431_v22  ;;  %v2997_v22 = vld [vmem:[%s4385_s13 + $0x80] sm:$0xff] }
0x1069   :  { %v2429_v25 = vpop.permute.xlu0 %2428 }
0x106a   :  { %v2444_v31 = vsel %vm676_vm4, %v2442_v26, %v2429_v25  ;;  %v2994_v25 = vld [vmem:[%s4384_s12 + $0x1] ss:$0 sm:$0xff] }
0x106b   :  { %v2439_v27 = vpop.permute.xlu1 %2438 }
0x106c   :  { %v2447_v37 = vsel %vm1141_vm5, %v2445_v35, %v2439_v27 }
0x106d   :  { %v2437_v33 = vpop.permute.xlu0 %2436 }
0x106e   :  { %v2446_v36 = vsel %vm1141_vm5, %v2444_v31, %v2437_v33 }
0x106f   :  { %3412 = vmatprep.mubr.msk.f32.mxu0 %vm176_vm2, %v2446_v36  ;;  %v2795_v36 = vld [vmem:[%s4387_s15 + $0x18] sm:$0xff] }
0x1070   :  { %3413 = vmatmul.mubr.msk.f32.vlgmr.msra.gmra.mxu0 %vm176_vm2, %v2447_v37  ;;  %3461 = vmatprep.subr.mxu1 %v2795_v36  ;;  %v2794_v37 = vld [vmem:[%s4387_s15 + $0x10] sm:$0xff] }
0x1071   :  { %3427 = vmatpush3.msra.mxu0 %v3012_v44 }
0x1072   :  { %3428 = vmatprep.subr.mxu0 %v3011_v24 }
0x1073   :  { %3429 = vmatpush3.msra.mxu0 %v3011_v24 }
0x1074   :  { %3430 = vmatprep.subr.mxu0 %v3010_v23 }
0x1075   :  { %3431 = vmatpush3.msra.mxu0 %v3010_v23 }
0x1076   :  { %3432 = vmatprep.subr.mxu0 %v3009_v57 }
0x1077   :  { %3433 = vmatpush3.msra.mxu0 %v3009_v57 }
0x1078   :  { %3434 = vmatprep.subr.mxu0 %v3008_v58 }
0x1079   :  { %3435 = vmatpush3.msra.mxu0 %v3008_v58 }
0x107a   :  { %3436 = vmatprep.subr.mxu0 %v3007_v59 }
0x107b   :  { %3437 = vmatpush3.msra.mxu0 %v3007_v59 }
0x107c   :  { %3438 = vmatprep.subr.mxu0 %v3006_v32 }
0x107d   :  { %3439 = vmatpush3.msra.mxu0 %v3006_v32 }
0x107e   :  { %3440 = vmatprep.subr.mxu0 %v3005_v34 }
0x107f   :  { %3441 = vmatpush3.msra.mxu0 %v3005_v34 }
0x1080   :  { %3442 = vmatprep.subr.mxu0 %v3004_v40 }
0x1081   :  { %3443 = vmatpush3.msra.mxu0 %v3004_v40 }
0x1082   :  { %3444 = vmatprep.subr.mxu0 %v3003_v42 }
0x1083   :  { %3445 = vmatpush3.msra.mxu0 %v3003_v42 }
0x1084   :  { %3446 = vmatprep.subr.mxu0 %v3002_v60 }
0x1085   :  { %3447 = vmatpush3.msra.mxu0 %v3002_v60 }
0x1086   :  { %3448 = vmatprep.subr.mxu0 %v3001_v61 }
0x1087   :  { %3449 = vmatpush3.msra.mxu0 %v3001_v61 }
0x1088   :  { %3450 = vmatprep.subr.mxu0 %v3000_v18 }
0x1089   :  { %3451 = vmatpush3.msra.mxu0 %v3000_v18 }
0x108a   :  { %3452 = vmatprep.subr.mxu0 %v2999_v19 }
0x108b   :  { %3453 = vmatpush3.msra.mxu0 %v2999_v19 }
0x108c   :  { %3454 = vmatprep.subr.mxu0 %v2998_v21 }
0x108d   :  { %3455 = vmatpush3.msra.mxu0 %v2998_v21 }
0x108e   :  { %3456 = vmatprep.subr.mxu0 %v2997_v22 }
0x108f   :  { %3457 = vmatpush3.msra.mxu0 %v2997_v22 }
0x1130   :  { %v3414_v38 = vpop.f32.mrf.mxu0 }
0x1131   :  { %v2535_v43 = vadd.f32 %v3414_v38, %v4075_v62  ;;  %v2793_v38 = vld [vmem:[%s4387_s15 + $0x8] sm:$0xff] }
0x1132   :  { %v2525_v45 = vpop.f32.mrf.mxu0 }
0x1133   :  { %v4252_v46 = vadd.f32 %v2984_v39, %v2535_v43  ;;  %v2534_v47 = vadd.f32 %v2525_v45, %v4078_v63 }
0x1135   :  { %v4255_v48 = vadd.f32 %v2984_v39, %v2534_v47  ;;  %v2553_v49 = vsel %vm176_vm2, %v4252_v46, 0.0  ;;  %v2792_v39 = vld [vmem:[%s4387_s15] sm:$0xff] }
0x1136   :  { %2554 = vadd.xlane.f32.xlu1 %v2553_v49  ;;  %v3014_v49 = vld [vmem:[%s4386_s14 + $0x1] ss:$0 sm:$0xff]  ;;  %s3571_s14 = scalar_lea.vmem %s2892_s19, 256 }
0x1137   :  { %v2550_v29 = vsel %vm176_vm2, %v4255_v48, 0.0  ;;  %p3572_p0 = scmp.ne.s32.totalorder %s2892_s19, %s3571_s14  ;;  %p3577_p2 = scmp.lt.s32.totalorder %s3571_s14, %s3571_s14 }
0x1138   :  { %2551 = vadd.xlane.f32.xlu0 %v2550_v29 }
0x1139   :  { %p3578_p3 = por %p3577_p2, %p3576_p1 }
0x113b   :  { %p3579_p4 = pnand %p3578_p3, %p3572_p0 }
0x11bf   :  { %v2555_v28 = vpop.xlane.xlu1 %2554 }
0x11c0   :  { %v2557_v50 = vmul.f32 0.03125, %v2555_v28 }
0x11c1   :  { %v2552_v51 = vpop.xlane.xlu0 %2551 }
0x11c2   :  { %v2556_v52 = vmul.f32 0.03125, %v2552_v51  ;;  %v4262_v62 = vsub.f32 %v4252_v46, %v2557_v50  ;;  %v3015_v51 = vld [vmem:[%s4388_s16] ss:$0 sm:$0xff] }
0x11c4   :  { %v4265_v53 = vsub.f32 %v4255_v48, %v2556_v52  ;;  %v2561_v41 = vmul.f32 %v4262_v62, %v4262_v62 }
0x11c6   :  { %v2560_v63 = vmul.f32 %v4265_v53, %v4265_v53  ;;  %v2565_v16 = vsel %vm176_vm2, %v2561_v41, 0.0 }
0x11c8   :  { %v2562_v14 = vsel %vm176_vm2, %v2560_v63, 0.0 }
0x11c9   :  { %2563 = vadd.xlane.f32.xlu0 %v2562_v14 }
0x11cd   :  { %2566 = vadd.xlane.f32.xlu0 %v2565_v16 }
0x1252   :  { %v2564_v0 = vpop.xlane.xlu0 %2563 }
0x1253   :  { %v2568_v1 = vmul.f32 0.03125, %v2564_v0 }
0x1255   :  { %v2570_v2 = vadd.f32 1e-05, %v2568_v1 }
0x1256   :  { %v2567_v3 = vpop.xlane.xlu0 %2566 }
0x1257   :  { %3567 = vrsqrt.f32 %v2570_v2  ;;  %v2569_v4 = vmul.f32 0.03125, %v2567_v3 }
0x1259   :  { %v2571_v5 = vadd.f32 1e-05, %v2569_v4 }
0x125b   :  { %3569 = vrsqrt.f32 %v2571_v5 }
0x1264   :  { %v3568_v6 = vpop.eup %3567 }
0x1265   :  { %v2574_v8 = vmul.f32 %v3568_v6, %v4265_v53 }
0x1267   :  { %v2582_v10 = vmul.f32 %v2987_v7, %v2574_v8 }
0x1268   :  { %v3570_v11 = vpop.eup %3569 }
0x1269   :  { %v2575_v12 = vmul.f32 %v3570_v11, %v4262_v62  ;;  %v2590_v13 = vadd.f32 %v2988_v9, %v2582_v10 }
0x126b   :  { %v2583_v15 = vmul.f32 %v2987_v7, %v2575_v12  ;;  %3423 = vmatprep.mubr.msk.f32.mxu1 %vm176_vm2, %v2590_v13 }
0x126d   :  { %v2591_v17 = vadd.f32 %v2988_v9, %v2583_v15 }
0x126f   :  { %3424 = vmatmul.mubr.msk.f32.vlgmr.msra.gmra.mxu1 %vm176_vm2, %v2591_v17 }
0x1270   :  { %3462 = vmatpush3.msra.mxu1 %v2795_v36 }
0x1271   :  { %3463 = vmatprep.subr.mxu1 %v2794_v37 }
0x1272   :  { %3464 = vmatpush3.msra.mxu1 %v2794_v37 }
0x1273   :  { %3465 = vmatprep.subr.mxu1 %v2793_v38 }
0x1274   :  { %3466 = vmatpush3.msra.mxu1 %v2793_v38 }
0x1275   :  { %3467 = vmatprep.subr.mxu1 %v2792_v39 }
0x1276   :  { %3468 = vmatpush3.msra.mxu1 %v2792_v39 }
0x132f   :  { %v3425_v26 = vpop.f32.mrf.mxu1 }
0x1330   :  { %v2683_v27 = vadd.f32 %v3425_v26, %v2994_v25 }
0x1331   :  { %v2677_v30 = vpop.f32.mrf.mxu1 }
0x1332   :  { %v2678_v31 = vadd.f32 %v2994_v25, %v2677_v30  ;;  %v2687_v35 = vmax.f32 %v2683_v27, 0.0 }
0x1334   :  { %v2686_v33 = vmax.f32 %v2678_v31, 0.0 }
0x1336   :  { %3458 = vmatprep.mubr.f32.mxu0 %v2686_v33 }
0x1337   :  { %3459 = vmatmul.mubr.f32.vlgmr.msra.gmra.mxu0 %v2687_v35 }
0x13f7   :  { %v3460_v43 = vpop.f32.mrf.mxu0 }
0x13f8   :  { %v2781_v45 = vadd.f32 %v3460_v43, %v4252_v46 }
0x13f9   :  { %v2771_v47 = vpop.f32.mrf.mxu0 }
0x13fa   :  { %v2780_v29 = vadd.f32 %v2771_v47, %v4255_v48  ;;  %v2791_v50 = vadd.f32 %v3014_v49, %v2781_v45 }
0x13fc   :  { %v2790_v28 = vadd.f32 %v3014_v49, %v2780_v29 }
0x13fe   :  { %3469 = vmatprep.mubr.msk.f32.mxu1 %vm176_vm2, %v2790_v28 }
0x13ff   :  { %3470 = vmatmul.mubr.msk.f32.vlgmr.msra.gmra.mxu1 %vm176_vm2, %v2791_v50 }
0x14bf   :  { %v3471_v52 = vpop.f32.mrf.mxu1 }
0x14c0   :  { %v2881_v46 = vadd.f32 %v3471_v52, %v3015_v51 }
0x14c1   :  { %v2875_v62 = vpop.f32.mrf.mxu1 }
0x14c2   :  { %2885 = vst [vmem:[#allocation2 + $0x8] sm:$0xff] %v2881_v46  ;;  %v2876_v53 = vadd.f32 %v3015_v51, %v2875_v62 }
0x14c4   :  { %2884 = vst [vmem:[#allocation2] sm:$0xff] %v2876_v53 }
0x14c5   :  { %3582 = shalt.err (!%p3579_p4)
}
0x14c6   :  { %s3610_s1 = smov 128  }
0x14c7   :  { %2897 = dma.vmem_to_hbm [thread:$0]  %s2892_s19, 256, %s4389_s17, [#allocation3], %s3610_s1, %s3610_s1, %s4408_s2  }
0x14c8   :  { %3591 = dma.done.wait [#allocation3], 256  }
0x14c9   :  { %3592 = vsyncadd [#allocation3], 4294967040 }
0x14ca   :  { %2901 = vsyncpa [#allocation3], 1 }

</bundles_post_ra>
